<compile_context>
chip_gen: v7x
topology: tpu7x:2x2x1
jax: 0.10.0
libtpu: 0.0.40
codegen_flags: <defaults>
</compile_context>

<pallas_src>
import math
from functools import partial

import jax
import jax.numpy as jnp
from jax.experimental import pallas as pl
from jax.experimental.pallas import tpu as pltpu


# ----------------------------------------------------------------------------
# Shared math helpers (pure jnp; usable both inside kernels and in reference)
# ----------------------------------------------------------------------------
def _layernorm(x, w, b, eps=1e-5):
    mu = jnp.mean(x, axis=-1, keepdims=True)
    var = jnp.mean(jnp.square(x - mu), axis=-1, keepdims=True)
    return (x - mu) * jax.lax.rsqrt(var + eps) * w + b


def positional_encoding(max_len, d_model):
    position = jnp.arange(max_len, dtype=jnp.float32)[:, None]
    div_term = jnp.exp(
        jnp.arange(0, d_model, 2, dtype=jnp.float32) * (-math.log(10000.0) / d_model)
    )
    pe = jnp.zeros((max_len, d_model), jnp.float32)
    pe = pe.at[:, 0::2].set(jnp.sin(position * div_term))
    pe = pe.at[:, 1::2].set(jnp.cos(position * div_term))
    return pe


# ----------------------------------------------------------------------------
# Kernel 1: embed/fuse + ALL transformer layers + output norm + organic gate.
#   grid = (B, L) ["parallel", "arbitrary"];
#   per-batch activation lives in a (S, D) f32 VMEM scratch across layer steps.
# ----------------------------------------------------------------------------
def fused_stack_kernel(item_ref, aud_ref, pe_ref, mb_ref,
                       wa1_ref, ba1_ref, wa2_ref, ba2_ref,
                       wfi_ref, wfa_ref, bfu_ref,
                       wqkv_ref, bqkv_ref, wo_ref, bo_ref, ob_ref,
                       n1w_ref, n1b_ref, n2w_ref, n2b_ref,
                       w1_ref, b1_ref, w2_ref, b2_ref,
                       onw_ref, onb_ref, gwx_ref, ogb_ref,
                       out_ref, x_scr, *, S, D, H):
    l = pl.program_id(1)
    n_layers = pl.num_programs(1)
    dk = D // H
    scale = 1.0 / math.sqrt(dk)
    bf16 = jnp.bfloat16

    # --- prologue (first layer step of each batch row):
    #     audio projection MLP + fusion layer + positional encoding -----------
    @pl.when(l == 0)
    def _():
        ah = jnp.maximum(
            jnp.dot(aud_ref[...], wa1_ref[...],
                    preferred_element_type=jnp.float32) + ba1_ref[...], 0.0)
        audio_emb = (jnp.dot(ah.astype(bf16), wa2_ref[...],
                             preferred_element_type=jnp.float32) + ba2_ref[...])
        fused = (jnp.dot(item_ref[...], wfi_ref[...],
                         preferred_element_type=jnp.float32)
                 + jnp.dot(audio_emb.astype(bf16), wfa_ref[...],
                           preferred_element_type=jnp.float32)
                 + bfu_ref[...])
        x_scr[...] = jnp.maximum(fused, 0.0) + pe_ref[...]

    # --- transformer block l (weights streamed per layer step) ---------------
    x = x_scr[...]                                                # (S, D) f32

    # fused QKV projection: one (S, D) @ (D, 3D) MXU op
    qkv = (jnp.dot(x.astype(bf16), wqkv_ref[...],
                   preferred_element_type=jnp.float32) + bqkv_ref[...])  # (S, 3D)

    # Head-batched attention: pack heads once onto a leading batch axis, then
    # a SINGLE scores einsum, SINGLE softmax and SINGLE context einsum.
    # TODO(synk): with tile-aligned dk (>=128 lanes, see perf review) the
    #             stack-of-slices below becomes a plain reshape.
    def split_heads(off):
        return jnp.stack([qkv[:, off + h_i * dk: off + (h_i + 1) * dk]
                          for h_i in range(H)], axis=0).astype(bf16)   # (H, S, dk)

    q = split_heads(0)
    k = split_heads(D)
    v = split_heads(2 * D)

    scores = jnp.einsum('hqc,hkc->hqk', q, k,
                        preferred_element_type=jnp.float32) * scale    # (H, S, S)
    # organic bias is per (head, query); padding-mask bias is per key
    scores = scores + ob_ref[...][:, :, None] + mb_ref[...]
    m = jnp.max(scores, axis=-1, keepdims=True)                        # f32 softmax
    e = jnp.exp(scores - m)
    p = e * pl.reciprocal(jnp.sum(e, axis=-1, keepdims=True), approx=True)
    ctx_h = jnp.einsum('hqk,hkc->hqc', p.astype(bf16), v,
                       preferred_element_type=jnp.float32)             # (H, S, dk)
    ctx = jnp.concatenate([ctx_h[h_i] for h_i in range(H)], axis=-1)   # (S, D)

    attn_out = (jnp.dot(ctx.astype(bf16), wo_ref[...],
                        preferred_element_type=jnp.float32) + bo_ref[...])
    x1 = _layernorm(x + attn_out, n1w_ref[...], n1b_ref[...])
    hid = jnp.maximum(
        jnp.dot(x1.astype(bf16), w1_ref[...],
                preferred_element_type=jnp.float32) + b1_ref[...], 0.0)
    ff = (jnp.dot(hid.astype(bf16), w2_ref[...],
                  preferred_element_type=jnp.float32) + b2_ref[...])
    x2 = _layernorm(x1 + ff, n2w_ref[...], n2b_ref[...])
    x_scr[...] = x2

    # --- epilogue (last layer step): output_norm + organic gate --------------
    @pl.when(l == n_layers - 1)
    def _():
        xn = _layernorm(x2, onw_ref[...], onb_ref[...])
        gate = jax.nn.sigmoid(
            jnp.dot(xn.astype(bf16), gwx_ref[...],
                    preferred_element_type=jnp.float32) + ogb_ref[...])
        out_ref[...] = (xn * gate).astype(out_ref.dtype)


# ----------------------------------------------------------------------------
# Kernel 2: output projection -> logits, tiled over (BS rows, padded n_items).
# ----------------------------------------------------------------------------
def proj_kernel(x_ref, pw_ref, pb_ref, out_ref):
    # TODO(synk): on v7x, feed an fp8-quantized weight tile (per-tile scales)
    #             and optionally emit bf16 logits to halve HBM writeback.
    out_ref[...] = (jnp.dot(x_ref[...], pw_ref[...],
                            preferred_element_type=jnp.float32)
                    + pb_ref[...]).astype(out_ref.dtype)


# ----------------------------------------------------------------------------
# Full model forward (wrapper: gather + bias/layout prep + two pallas_calls)
# ----------------------------------------------------------------------------
def yambda_forward(params, cfg, item_ids, audio_features, is_organic,
                   padding_mask=None):
    B, S = item_ids.shape
    D, H = cfg['d_model'], cfg['n_heads']
    L, N, A = cfg['n_layers'], cfg['n_items'], cfg['audio_dim']
    BS = B * S
    c16 = lambda a: a.astype(jnp.bfloat16)

    if padding_mask is None:
        padding_mask = (item_ids != 0).astype(jnp.float32)

    # --- wrapper glue: gather + lane-friendly additive biases ---------------
    # TODO(synk): move this gather into the Pallas pipeline via scalar prefetch.
    item_emb = c16(jnp.take(params['emb'], item_ids, axis=0))            # (B, S, D)
    audio3d = c16(audio_features)                                         # (B, S, A)
    pe = positional_encoding(cfg['max_seq_len'], D)[:S]                   # (S, D)
    mask_bias = jnp.where(padding_mask == 0.0, -1e9,
                          0.0)[:, None, :].astype(jnp.float32)            # (B, 1, S)
    org = is_organic.astype(jnp.float32)                                  # (B, S)
    # per-layer / per-batch / per-head / per-query organic bias  (L, B, H, S)
    org_bias = (org[None, :, None, :] * params['worg_w'][:, None, :, None]
                + params['worg_b'][:, None, :, None]).astype(jnp.float32)
    # organic contribution to the output gate                    (B, S, D)
    org_gate_bias = (org[:, :, None] * params['gwo']
                     + params['gb']).astype(jnp.float32)

    # (array, kind): 'c' = shared const, 'b' = batch-blocked (leading B),
    #                'l' = layer-blocked (leading L), 'lb' = (L, B, ...)
    arg_defs = [
        (item_emb, 'b'), (audio3d, 'b'), (pe, 'c'), (mask_bias, 'b'),
        (c16(params['wa1']), 'c'), (params['ba1'], 'c'),
        (c16(params['wa2']), 'c'), (params['ba2'], 'c'),
        (c16(params['wf_item']), 'c'), (c16(params['wf_audio']), 'c'),
        (params['bf'], 'c'),
        (c16(params['wqkv']), 'l'), (params['bqkv'], 'l'),
        (c16(params['wo']), 'l'), (params['bo'], 'l'), (org_bias, 'lb'),
        (params['n1w'], 'l'), (params['n1b'], 'l'),
        (params['n2w'], 'l'), (params['n2b'], 'l'),
        (c16(params['w1']), 'l'), (params['b1'], 'l'),
        (c16(params['w2']), 'l'), (params['b2'], 'l'),
        (params['onw'], 'c'), (params['onb'], 'c'), (c16(params['gwx']), 'c'),
        (org_gate_bias, 'b'),
    ]

    def make_spec(a, kind):
        if kind == 'c':
            nd = a.ndim
            return pl.BlockSpec(a.shape, lambda b, l, nd=nd: (0,) * nd)
        if kind == 'b':
            rest = tuple(a.shape[1:]); n = len(rest)
            return pl.BlockSpec((None,) + rest, lambda b, l, n=n: (b,) + (0,) * n)
        if kind == 'l':
            rest = tuple(a.shape[1:]); n = len(rest)
            return pl.BlockSpec((None,) + rest, lambda b, l, n=n: (l,) + (0,) * n)
        rest = tuple(a.shape[2:]); n = len(rest)            # 'lb'
        return pl.BlockSpec((None, None) + rest, lambda b, l, n=n: (l, b) + (0,) * n)

    def block_bytes(a, kind):
        div = {'c': 1, 'b': B, 'l': L, 'lb': L * B}[kind]
        return (a.size * a.dtype.itemsize) // div

    inputs = [a for a, _ in arg_defs]
    in_specs = [make_spec(a, k) for a, k in arg_defs]

    # explicit VMEM budget: double-buffered blocks + scratch + headroom,
    # capped at 64 MiB so the same budget is valid on v7x (64 MiB physical).
    resident = sum(block_bytes(a, k) for a, k in arg_defs)
    out_blk = S * D * 2                           # (None, S, D) bf16 output block
    scratch_bytes = S * D * 4                     # f32 activation scratch
    vmem_fused = int(min(max(2 * (resident + out_blk) + scratch_bytes + (4 << 20),
                             16 << 20), 64 << 20))

    kern = partial(fused_stack_kernel, S=S, D=D, H=H)
    xg = pl.pallas_call(
        kern,
        out_shape=jax.ShapeDtypeStruct((B, S, D), jnp.bfloat16),
        grid=(B, L),
        in_specs=in_specs,
        out_specs=pl.BlockSpec((None, S, D), lambda b, l: (b, 0, 0)),
        scratch_shapes=[pltpu.VMEM((S, D), jnp.float32)],
        compiler_params=pltpu.CompilerParams(
            dimension_semantics=("parallel", "arbitrary"),
            vmem_limit_bytes=vmem_fused),
    )(*inputs)

    # --- output projection, tiled over (BS rows) x (padded n_items) ----------
    x2d = xg.reshape(BS, D)
    Np = ((N + 127) // 128) * 128                 # lane-dense: pad vocab to 128
    pw = c16(params['pw'])
    pb = params['pb']
    if Np != N:
        pw = jnp.pad(pw, ((0, 0), (0, Np - N)))
        pb = jnp.pad(pb, ((0, 0), (0, Np - N)))
    TN = next((t for t in (2048, 1024, 512, 256, 128) if Np % t == 0), Np)
    TM = next((t for t in (512, 256, 128) if BS % t == 0), BS)
    grid = (BS // TM, Np // TN)

    proj_blocks = TM * D * 2 + D * TN * 2 + TN * 4 + TM * TN * 4
    vmem_proj = int(min(max(2 * proj_blocks + (4 << 20), 16 << 20), 64 << 20))

    logits = pl.pallas_call(
        proj_kernel,
        out_shape=jax.ShapeDtypeStruct((BS, Np), jnp.float32),
        grid=grid,
        in_specs=[pl.BlockSpec((TM, D), lambda m, n: (m, 0)),
                  pl.BlockSpec((D, TN), lambda m, n: (0, n)),
                  pl.BlockSpec((1, TN), lambda m, n: (0, n))],
        out_specs=pl.BlockSpec((TM, TN), lambda m, n: (m, n)),
        compiler_params=pltpu.CompilerParams(
            dimension_semantics=("parallel", "parallel"),
            vmem_limit_bytes=vmem_proj),
    )(x2d, pw, pb)

    return logits[:, :N].reshape(B, S, N)


# ----------------------------------------------------------------------------
# Deterministic parameter init (shapes mirror the PyTorch __init__; per-layer
# weights are stacked along a leading (L, ...) axis for the fused kernel).
# ----------------------------------------------------------------------------
def init_params(key, cfg):
    D, H, F = cfg['d_model'], cfg['n_heads'], cfg['d_ff']
    A, L, N = cfg['audio_dim'], cfg['n_layers'], cfg['n_items']
    keys = iter(jax.random.split(key, 256))

    def dense(in_d, out_d):
        w = jax.random.normal(next(keys), (in_d, out_d), jnp.float32) * 0.05
        b = jax.random.normal(next(keys), (1, out_d), jnp.float32) * 0.02
        return w, b

    p = {}
    emb = jax.random.normal(next(keys), (N + 1, D), jnp.float32) * 0.05
    p['emb'] = emb.at[0].set(0.0)                               # padding_idx=0
    p['wa1'], p['ba1'] = dense(A, D)
    p['wa2'], p['ba2'] = dense(D, D)
    wf, p['bf'] = dense(2 * D, D)
    p['wf_item'], p['wf_audio'] = wf[:D], wf[D:]

    acc = {k: [] for k in ['wqkv', 'bqkv', 'wo', 'bo', 'worg_w', 'worg_b',
                           'n1w', 'n1b', 'n2w', 'n2b', 'w1', 'b1', 'w2', 'b2']}
    for _ in range(L):
        wq, bq = dense(D, D)
        wk, bk = dense(D, D)
        wv, bv = dense(D, D)
        acc['wqkv'].append(jnp.concatenate([wq, wk, wv], axis=1))
        acc['bqkv'].append(jnp.concatenate([bq, bk, bv], axis=1))
        wo_, bo_ = dense(D, D)
        acc['wo'].append(wo_); acc['bo'].append(bo_)
        ow, ob = dense(1, H)                                     # W_organic: Linear(1, H)
        acc['worg_w'].append(ow[0]); acc['worg_b'].append(ob[0])
        acc['n1w'].append(jnp.ones((1, D))); acc['n1b'].append(jnp.zeros((1, D)))
        acc['n2w'].append(jnp.ones((1, D))); acc['n2b'].append(jnp.zeros((1, D)))
        w1_, b1_ = dense(D, F)
        acc['w1'].append(w1_); acc['b1'].append(b1_)
        w2_, b2_ = dense(F, D)
        acc['w2'].append(w2_); acc['b2'].append(b2_)
    for k, v in acc.items():
        p[k] = jnp.stack(v)                                      # (L, ...)

    p['onw'], p['onb'] = jnp.ones((1, D)), jnp.zeros((1, D))
    gw, p['gb'] = dense(D + 1, D)                                # organic_gate
    p['gwx'], p['gwo'] = gw[:D], gw[D:]
    p['pw'], p['pb'] = dense(D, N)                               # output_projection
    return p


# ----------------------------------------------------------------------------
# Pure-JAX f32 reference (mirror of the PyTorch forward, eval mode)
# ----------------------------------------------------------------------------
def reference_forward(params, cfg, item_ids, audio, is_organic):
    B, S = item_ids.shape
    D, H, L = cfg['d_model'], cfg['n_heads'], cfg['n_layers']
    dk = D // H
    item_emb = jnp.take(params['emb'], item_ids, axis=0)
    h = jax.nn.relu(audio @ params['wa1'] + params['ba1'])
    audio_emb = h @ params['wa2'] + params['ba2']
    x = jax.nn.relu(item_emb @ params['wf_item'] + audio_emb @ params['wf_audio']
                    + params['bf'])
    x = x + positional_encoding(cfg['max_seq_len'], D)[:S]
    padding_mask = (item_ids != 0).astype(jnp.float32)
    org = is_organic.astype(jnp.float32)[..., None]              # (B, S, 1)
    for l in range(L):
        qkv = x @ params['wqkv'][l] + params['bqkv'][l]

        def heads(y):
            return y.reshape(B, S, H, dk).transpose(0, 2, 1, 3)
        q = heads(qkv[..., :D]); k = heads(qkv[..., D:2 * D]); v = heads(qkv[..., 2 * D:])
        scores = jnp.einsum('bhqd,bhkd->bhqk', q, k) / math.sqrt(dk)
        ow = org * params['worg_w'][l] + params['worg_b'][l]     # (B, S, H)
        scores = scores + ow.transpose(0, 2, 1)[..., None]
        scores = jnp.where(padding_mask[:, None, None, :] == 0.0, -1e9, scores)
        attn = jax.nn.softmax(scores, axis=-1)
        ctx = jnp.einsum('bhqk,bhkd->bhqd', attn, v).transpose(0, 2, 1, 3).reshape(B, S, D)
        attn_out = ctx @ params['wo'][l] + params['bo'][l]
        x = _layernorm(x + attn_out, params['n1w'][l], params['n1b'][l])
        ff = jax.nn.relu(x @ params['w1'][l] + params['b1'][l]) @ params['w2'][l] + params['b2'][l]
        x = _layernorm(x + ff, params['n2w'][l], params['n2b'][l])
    x = _layernorm(x, params['onw'], params['onb'])
    gate = jax.nn.sigmoid(x @ params['gwx'] + org * params['gwo'] + params['gb'])
    x = x * gate
    return x @ params['pw'] + params['pb']


# ----------------------------------------------------------------------------
if __name__ == "__main__":
    cfg = dict(n_items=128, d_model=32, n_heads=4, n_layers=2, d_ff=64,
               max_seq_len=16, dropout=0.1, audio_dim=16)
    key = jax.random.PRNGKey(0)
    pkey, ikey, akey, okey = jax.random.split(key, 4)
    params = init_params(pkey, cfg)

    B, S = 2, 8
    # all ids non-zero -> padding_mask (derived in forward) is all ones
    item_ids = jax.random.randint(ikey, (B, S), 1, cfg['n_items'] + 1)
    audio = jax.random.normal(akey, (B, S, cfg['audio_dim']), jnp.float32)
    is_organic = jax.random.bernoulli(okey, 0.5, (B, S)).astype(jnp.float32)

    fwd = jax.jit(lambda p, ids, aud, org: yambda_forward(p, cfg, ids, aud, org))
    logits = jax.block_until_ready(fwd(params, item_ids, audio, is_organic))
    assert logits.shape == (B, S, cfg['n_items'])
    assert logits.dtype == jnp.float32

    ref = jax.block_until_ready(reference_forward(params, cfg, item_ids, audio, is_organic))
    if not jnp.allclose(logits, ref, atol=5e-2, rtol=5e-2):
        err = jnp.max(jnp.abs(logits - ref))
        raise AssertionError(f"Pallas output mismatches pure-JAX reference (max abs err {err})")

    print("KERNEL_OK")
</pallas_src>

<mosaic_0001>
module attributes {stable_mosaic.version = 11 : i64} {
  func.func @proj_kernel(%arg0: i32, %arg1: i32, %arg2: memref<16x32xbf16, #tpu.memory_space<vmem>>, %arg3: memref<32x128xbf16, #tpu.memory_space<vmem>>, %arg4: memref<1x128xf32, #tpu.memory_space<vmem>>, %arg5: memref<16x128xf32, #tpu.memory_space<vmem>>) attributes {dimension_semantics = [#tpu.dimension_semantics<parallel>, #tpu.dimension_semantics<parallel>], iteration_bounds = array<i64: 1, 1>, scalar_prefetch = 0 : i64, scratch_operands = 0 : i64, tpu.core_type = #tpu.core_type<tc>, window_params = [{transform_indices = @transform_0, window_bounds = array<i64: 16, 32>}, {transform_indices = @transform_1, window_bounds = array<i64: 32, 128>}, {transform_indices = @transform_2, window_bounds = array<i64: 1, 128>}, {transform_indices = @transform_3, window_bounds = array<i64: 16, 128>}]} {
    %c0 = arith.constant 0 : index
    %c0_0 = arith.constant 0 : index
    %0 = vector.load %arg2[%c0, %c0_0] : memref<16x32xbf16, #tpu.memory_space<vmem>>, vector<16x32xbf16>
    %c0_1 = arith.constant 0 : index
    %c0_2 = arith.constant 0 : index
    %1 = vector.load %arg3[%c0_1, %c0_2] : memref<32x128xbf16, #tpu.memory_space<vmem>>, vector<32x128xbf16>
    %cst = arith.constant dense<0.000000e+00> : vector<16x128xf32>
    %2 = tpu.matmul %0, %1, %cst {dimension_numbers = #tpu.dot_dimension_numbers<[1], [0], [0], [1], [0, 0, 1, 1], [], []>} : vector<16x32xbf16>, vector<32x128xbf16>, vector<16x128xf32> -> vector<16x128xf32>
    %c0_3 = arith.constant 0 : index
    %c0_4 = arith.constant 0 : index
    %3 = vector.load %arg4[%c0_3, %c0_4] : memref<1x128xf32, #tpu.memory_space<vmem>>, vector<1x128xf32>
    %4 = vector.broadcast %3 : vector<1x128xf32> to vector<16x128xf32>
    %5 = arith.addf %2, %4 : vector<16x128xf32>
    %c0_5 = arith.constant 0 : index
    %c0_6 = arith.constant 0 : index
    %6 = vector.load %arg5[%c0_5, %c0_6] : memref<16x128xf32, #tpu.memory_space<vmem>>, vector<16x128xf32>
    tpu.vector_store %arg5[%c0_5, %c0_6], %5 {strides = array<i32>} : memref<16x128xf32, #tpu.memory_space<vmem>>, vector<16x128xf32>,
    return
  }
  func.func @transform_0(%arg0: i32, %arg1: i32) -> (i32, i32) {
    %c0_i32 = arith.constant 0 : i32
    %c0_i32_0 = arith.constant 0 : i32
    return %arg0, %c0_i32 : i32, i32
  }
  func.func @transform_1(%arg0: i32, %arg1: i32) -> (i32, i32) {
    %c0_i32 = arith.constant 0 : i32
    %c0_i32_0 = arith.constant 0 : i32
    return %c0_i32, %arg1 : i32, i32
  }
  func.func @transform_2(%arg0: i32, %arg1: i32) -> (i32, i32) {
    %c0_i32 = arith.constant 0 : i32
    %c0_i32_0 = arith.constant 0 : i32
    return %c0_i32, %arg1 : i32, i32
  }
  func.func @transform_3(%arg0: i32, %arg1: i32) -> (i32, i32) {
    %c0_i32 = arith.constant 0 : i32
    return %arg0, %arg1 : i32, i32
  }
}

module attributes {stable_mosaic.version = 11 : i64} {
  func.func @fused_stack_kernel(%arg0: i32, %arg1: i32, %arg2: memref<1x8x32xbf16, #tpu.memory_space<vmem>>, %arg3: memref<1x8x16xbf16, #tpu.memory_space<vmem>>, %arg4: memref<8x32xf32, #tpu.memory_space<vmem>>, %arg5: memref<1x1x8xf32, #tpu.memory_space<vmem>>, %arg6: memref<16x32xbf16, #tpu.memory_space<vmem>>, %arg7: memref<1x32xf32, #tpu.memory_space<vmem>>, %arg8: memref<32x32xbf16, #tpu.memory_space<vmem>>, %arg9: memref<1x32xf32, #tpu.memory_space<vmem>>, %arg10: memref<32x32xbf16, #tpu.memory_space<vmem>>, %arg11: memref<32x32xbf16, #tpu.memory_space<vmem>>, %arg12: memref<1x32xf32, #tpu.memory_space<vmem>>, %arg13: memref<1x32x96xbf16, #tpu.memory_space<vmem>>, %arg14: memref<1x1x96xf32, #tpu.memory_space<vmem>>, %arg15: memref<1x32x32xbf16, #tpu.memory_space<vmem>>, %arg16: memref<1x1x32xf32, #tpu.memory_space<vmem>>, %arg17: memref<1x1x4x8xf32, #tpu.memory_space<vmem>>, %arg18: memref<1x1x32xf32, #tpu.memory_space<vmem>>, %arg19: memref<1x1x32xf32, #tpu.memory_space<vmem>>, %arg20: memref<1x1x32xf32, #tpu.memory_space<vmem>>, %arg21: memref<1x1x32xf32, #tpu.memory_space<vmem>>, %arg22: memref<1x32x64xbf16, #tpu.memory_space<vmem>>, %arg23: memref<1x1x64xf32, #tpu.memory_space<vmem>>, %arg24: memref<1x64x32xbf16, #tpu.memory_space<vmem>>, %arg25: memref<1x1x32xf32, #tpu.memory_space<vmem>>, %arg26: memref<1x32xf32, #tpu.memory_space<vmem>>, %arg27: memref<1x32xf32, #tpu.memory_space<vmem>>, %arg28: memref<32x32xbf16, #tpu.memory_space<vmem>>, %arg29: memref<1x8x32xf32, #tpu.memory_space<vmem>>, %arg30: memref<1x8x32xbf16, #tpu.memory_space<vmem>>, %arg31: memref<8x32xf32, #tpu.memory_space<vmem>>) attributes {dimension_semantics = [#tpu.dimension_semantics<parallel>, #tpu.dimension_semantics<arbitrary>], iteration_bounds = array<i64: 2, 2>, scalar_prefetch = 0 : i64, scratch_operands = 1 : i64, tpu.core_type = #tpu.core_type<tc>, window_params = [{transform_indices = @transform_0, window_bounds = array<i64: 1, 8, 32>}, {transform_indices = @transform_1, window_bounds = array<i64: 1, 8, 16>}, {pipeline_mode = #tpu.pipeline_mode<synchronous>, transform_indices = @transform_2, window_bounds = array<i64: 8, 32>}, {transform_indices = @transform_3, window_bounds = array<i64: 1, 1, 8>}, {pipeline_mode = #tpu.pipeline_mode<synchronous>, transform_indices = @transform_4, window_bounds = array<i64: 16, 32>}, {pipeline_mode = #tpu.pipeline_mode<synchronous>, transform_indices = @transform_5, window_bounds = array<i64: 1, 32>}, {pipeline_mode = #tpu.pipeline_mode<synchronous>, transform_indices = @transform_6, window_bounds = array<i64: 32, 32>}, {pipeline_mode = #tpu.pipeline_mode<synchronous>, transform_indices = @transform_7, window_bounds = array<i64: 1, 32>}, {pipeline_mode = #tpu.pipeline_mode<synchronous>, transform_indices = @transform_8, window_bounds = array<i64: 32, 32>}, {pipeline_mode = #tpu.pipeline_mode<synchronous>, transform_indices = @transform_9, window_bounds = array<i64: 32, 32>}, {pipeline_mode = #tpu.pipeline_mode<synchronous>, transform_indices = @transform_10, window_bounds = array<i64: 1, 32>}, {transform_indices = @transform_11, window_bounds = array<i64: 1, 32, 96>}, {transform_indices = @transform_12, window_bounds = array<i64: 1, 1, 96>}, {transform_indices = @transform_13, window_bounds = array<i64: 1, 32, 32>}, {transform_indices = @transform_14, window_bounds = array<i64: 1, 1, 32>}, {transform_indices = @transform_15, window_bounds = array<i64: 1, 1, 4, 8>}, {transform_indices = @transform_16, window_bounds = array<i64: 1, 1, 32>}, {transform_indices = @transform_17, window_bounds = array<i64: 1, 1, 32>}, {transform_indices = @transform_18, window_bounds = array<i64: 1, 1, 32>}, {transform_indices = @transform_19, window_bounds = array<i64: 1, 1, 32>}, {transform_indices = @transform_20, window_bounds = array<i64: 1, 32, 64>}, {transform_indices = @transform_21, window_bounds = array<i64: 1, 1, 64>}, {transform_indices = @transform_22, window_bounds = array<i64: 1, 64, 32>}, {transform_indices = @transform_23, window_bounds = array<i64: 1, 1, 32>}, {pipeline_mode = #tpu.pipeline_mode<synchronous>, transform_indices = @transform_24, window_bounds = array<i64: 1, 32>}, {pipeline_mode = #tpu.pipeline_mode<synchronous>, transform_indices = @transform_25, window_bounds = array<i64: 1, 32>}, {pipeline_mode = #tpu.pipeline_mode<synchronous>, transform_indices = @transform_26, window_bounds = array<i64: 32, 32>}, {transform_indices = @transform_27, window_bounds = array<i64: 1, 8, 32>}, {transform_indices = @transform_28, window_bounds = array<i64: 1, 8, 32>}]} {
    %c0_i32 = arith.constant 0 : i32
    %0 = arith.cmpi eq, %arg1, %c0_i32 : i32
    %1 = arith.extui %0 : i1 to i32
    %c0_i32_0 = arith.constant 0 : i32
    %2 = arith.cmpi ne, %1, %c0_i32_0 : i32
    scf.if %2 {
      %c0_67 = arith.constant 0 : index
      %c0_68 = arith.constant 0 : index
      %c0_69 = arith.constant 0 : index
      %160 = vector.load %arg3[%c0_67, %c0_68, %c0_69] : memref<1x8x16xbf16, #tpu.memory_space<vmem>>, vector<1x8x16xbf16>
      %161 = vector.shape_cast %160 : vector<1x8x16xbf16> to vector<8x16xbf16>
      %c0_70 = arith.constant 0 : index
      %c0_71 = arith.constant 0 : index
      %162 = vector.load %arg6[%c0_70, %c0_71] : memref<16x32xbf16, #tpu.memory_space<vmem>>, vector<16x32xbf16>
      %cst_72 = arith.constant dense<0.000000e+00> : vector<8x32xf32>
      %163 = tpu.matmul %161, %162, %cst_72 {dimension_numbers = #tpu.dot_dimension_numbers<[1], [0], [0], [1], [0, 0, 1, 1], [], []>} : vector<8x16xbf16>, vector<16x32xbf16>, vector<8x32xf32> -> vector<8x32xf32>
      %c0_73 = arith.constant 0 : index
      %c0_74 = arith.constant 0 : index
      %164 = vector.load %arg7[%c0_73, %c0_74] : memref<1x32xf32, #tpu.memory_space<vmem>>, vector<1x32xf32>
      %165 = vector.broadcast %164 : vector<1x32xf32> to vector<8x32xf32>
      %166 = arith.addf %163, %165 : vector<8x32xf32>
      %cst_75 = arith.constant 0.000000e+00 : f32
      %167 = vector.broadcast %cst_75 : f32 to vector<8x32xf32>
      %168 = arith.maximumf %166, %167 : vector<8x32xf32>
      %169 = arith.truncf %168 : vector<8x32xf32> to vector<8x32xbf16>
      %c0_76 = arith.constant 0 : index
      %c0_77 = arith.constant 0 : index
      %170 = vector.load %arg8[%c0_76, %c0_77] : memref<32x32xbf16, #tpu.memory_space<vmem>>, vector<32x32xbf16>
      %cst_78 = arith.constant dense<0.000000e+00> : vector<8x32xf32>
      %171 = tpu.matmul %169, %170, %cst_78 {dimension_numbers = #tpu.dot_dimension_numbers<[1], [0], [0], [1], [0, 0, 1, 1], [], []>} : vector<8x32xbf16>, vector<32x32xbf16>, vector<8x32xf32> -> vector<8x32xf32>
      %c0_79 = arith.constant 0 : index
      %c0_80 = arith.constant 0 : index
      %172 = vector.load %arg9[%c0_79, %c0_80] : memref<1x32xf32, #tpu.memory_space<vmem>>, vector<1x32xf32>
      %173 = vector.broadcast %172 : vector<1x32xf32> to vector<8x32xf32>
      %174 = arith.addf %171, %173 : vector<8x32xf32>
      %c0_81 = arith.constant 0 : index
      %c0_82 = arith.constant 0 : index
      %c0_83 = arith.constant 0 : index
      %175 = vector.load %arg2[%c0_81, %c0_82, %c0_83] : memref<1x8x32xbf16, #tpu.memory_space<vmem>>, vector<1x8x32xbf16>
      %176 = vector.shape_cast %175 : vector<1x8x32xbf16> to vector<8x32xbf16>
      %c0_84 = arith.constant 0 : index
      %c0_85 = arith.constant 0 : index
      %177 = vector.load %arg10[%c0_84, %c0_85] : memref<32x32xbf16, #tpu.memory_space<vmem>>, vector<32x32xbf16>
      %cst_86 = arith.constant dense<0.000000e+00> : vector<8x32xf32>
      %178 = tpu.matmul %176, %177, %cst_86 {dimension_numbers = #tpu.dot_dimension_numbers<[1], [0], [0], [1], [0, 0, 1, 1], [], []>} : vector<8x32xbf16>, vector<32x32xbf16>, vector<8x32xf32> -> vector<8x32xf32>
      %179 = arith.truncf %174 : vector<8x32xf32> to vector<8x32xbf16>
      %c0_87 = arith.constant 0 : index
      %c0_88 = arith.constant 0 : index
      %180 = vector.load %arg11[%c0_87, %c0_88] : memref<32x32xbf16, #tpu.memory_space<vmem>>, vector<32x32xbf16>
      %cst_89 = arith.constant dense<0.000000e+00> : vector<8x32xf32>
      %181 = tpu.matmul %179, %180, %cst_89 {dimension_numbers = #tpu.dot_dimension_numbers<[1], [0], [0], [1], [0, 0, 1, 1], [], []>} : vector<8x32xbf16>, vector<32x32xbf16>, vector<8x32xf32> -> vector<8x32xf32>
      %182 = arith.addf %178, %181 : vector<8x32xf32>
      %c0_90 = arith.constant 0 : index
      %c0_91 = arith.constant 0 : index
      %183 = vector.load %arg12[%c0_90, %c0_91] : memref<1x32xf32, #tpu.memory_space<vmem>>, vector<1x32xf32>
      %184 = vector.broadcast %183 : vector<1x32xf32> to vector<8x32xf32>
      %185 = arith.addf %182, %184 : vector<8x32xf32>
      %cst_92 = arith.constant 0.000000e+00 : f32
      %186 = vector.broadcast %cst_92 : f32 to vector<8x32xf32>
      %187 = arith.maximumf %185, %186 : vector<8x32xf32>
      %c0_93 = arith.constant 0 : index
      %c0_94 = arith.constant 0 : index
      %188 = vector.load %arg4[%c0_93, %c0_94] : memref<8x32xf32, #tpu.memory_space<vmem>>, vector<8x32xf32>
      %189 = arith.addf %187, %188 : vector<8x32xf32>
      %c0_95 = arith.constant 0 : index
      %c0_96 = arith.constant 0 : index
      %190 = vector.load %arg31[%c0_95, %c0_96] : memref<8x32xf32, #tpu.memory_space<vmem>>, vector<8x32xf32>
      tpu.vector_store %arg31[%c0_95, %c0_96], %189 {strides = array<i32>} : memref<8x32xf32, #tpu.memory_space<vmem>>, vector<8x32xf32>,
    } else {
    }
    %c0 = arith.constant 0 : index
    %c0_1 = arith.constant 0 : index
    %3 = vector.load %arg31[%c0, %c0_1] : memref<8x32xf32, #tpu.memory_space<vmem>>, vector<8x32xf32>
    %4 = arith.truncf %3 : vector<8x32xf32> to vector<8x32xbf16>
    %c0_2 = arith.constant 0 : index
    %c0_3 = arith.constant 0 : index
    %c0_4 = arith.constant 0 : index
    %5 = vector.load %arg13[%c0_2, %c0_3, %c0_4] : memref<1x32x96xbf16, #tpu.memory_space<vmem>>, vector<1x32x96xbf16>
    %6 = vector.shape_cast %5 : vector<1x32x96xbf16> to vector<32x96xbf16>
    %cst = arith.constant dense<0.000000e+00> : vector<8x96xf32>
    %7 = tpu.matmul %4, %6, %cst {dimension_numbers = #tpu.dot_dimension_numbers<[1], [0], [0], [1], [0, 0, 1, 1], [], []>} : vector<8x32xbf16>, vector<32x96xbf16>, vector<8x96xf32> -> vector<8x96xf32>
    %c0_5 = arith.constant 0 : index
    %c0_6 = arith.constant 0 : index
    %c0_7 = arith.constant 0 : index
    %8 = vector.load %arg14[%c0_5, %c0_6, %c0_7] : memref<1x1x96xf32, #tpu.memory_space<vmem>>, vector<1x1x96xf32>
    %9 = vector.shape_cast %8 : vector<1x1x96xf32> to vector<1x96xf32>
    %10 = vector.broadcast %9 : vector<1x96xf32> to vector<8x96xf32>
    %11 = arith.addf %7, %10 : vector<8x96xf32>
    %12 = vector.extract_strided_slice %11 {offsets = [0, 0], sizes = [8, 8], strides = [1, 1]} : vector<8x96xf32> to vector<8x8xf32>
    %13 = vector.extract_strided_slice %11 {offsets = [0, 8], sizes = [8, 8], strides = [1, 1]} : vector<8x96xf32> to vector<8x8xf32>
    %14 = vector.extract_strided_slice %11 {offsets = [0, 16], sizes = [8, 8], strides = [1, 1]} : vector<8x96xf32> to vector<8x8xf32>
    %15 = vector.extract_strided_slice %11 {offsets = [0, 24], sizes = [8, 8], strides = [1, 1]} : vector<8x96xf32> to vector<8x8xf32>
    %16 = vector.shape_cast %12 : vector<8x8xf32> to vector<1x8x8xf32>
    %17 = vector.shape_cast %13 : vector<8x8xf32> to vector<1x8x8xf32>
    %18 = vector.shape_cast %14 : vector<8x8xf32> to vector<1x8x8xf32>
    %19 = vector.shape_cast %15 : vector<8x8xf32> to vector<1x8x8xf32>
    %20 = tpu.concatenate %16, %17, %18, %19 in 0 : vector<1x8x8xf32>, vector<1x8x8xf32>, vector<1x8x8xf32>, vector<1x8x8xf32> -> vector<4x8x8xf32>
    %21 = arith.truncf %20 : vector<4x8x8xf32> to vector<4x8x8xbf16>
    %22 = vector.extract_strided_slice %11 {offsets = [0, 32], sizes = [8, 8], strides = [1, 1]} : vector<8x96xf32> to vector<8x8xf32>
    %23 = vector.extract_strided_slice %11 {offsets = [0, 40], sizes = [8, 8], strides = [1, 1]} : vector<8x96xf32> to vector<8x8xf32>
    %24 = vector.extract_strided_slice %11 {offsets = [0, 48], sizes = [8, 8], strides = [1, 1]} : vector<8x96xf32> to vector<8x8xf32>
    %25 = vector.extract_strided_slice %11 {offsets = [0, 56], sizes = [8, 8], strides = [1, 1]} : vector<8x96xf32> to vector<8x8xf32>
    %26 = vector.shape_cast %22 : vector<8x8xf32> to vector<1x8x8xf32>
    %27 = vector.shape_cast %23 : vector<8x8xf32> to vector<1x8x8xf32>
    %28 = vector.shape_cast %24 : vector<8x8xf32> to vector<1x8x8xf32>
    %29 = vector.shape_cast %25 : vector<8x8xf32> to vector<1x8x8xf32>
    %30 = tpu.concatenate %26, %27, %28, %29 in 0 : vector<1x8x8xf32>, vector<1x8x8xf32>, vector<1x8x8xf32>, vector<1x8x8xf32> -> vector<4x8x8xf32>
    %31 = arith.truncf %30 : vector<4x8x8xf32> to vector<4x8x8xbf16>
    %32 = vector.extract_strided_slice %11 {offsets = [0, 64], sizes = [8, 8], strides = [1, 1]} : vector<8x96xf32> to vector<8x8xf32>
    %33 = vector.extract_strided_slice %11 {offsets = [0, 72], sizes = [8, 8], strides = [1, 1]} : vector<8x96xf32> to vector<8x8xf32>
    %34 = vector.extract_strided_slice %11 {offsets = [0, 80], sizes = [8, 8], strides = [1, 1]} : vector<8x96xf32> to vector<8x8xf32>
    %35 = vector.extract_strided_slice %11 {offsets = [0, 88], sizes = [8, 8], strides = [1, 1]} : vector<8x96xf32> to vector<8x8xf32>
    %36 = vector.shape_cast %32 : vector<8x8xf32> to vector<1x8x8xf32>
    %37 = vector.shape_cast %33 : vector<8x8xf32> to vector<1x8x8xf32>
    %38 = vector.shape_cast %34 : vector<8x8xf32> to vector<1x8x8xf32>
    %39 = vector.shape_cast %35 : vector<8x8xf32> to vector<1x8x8xf32>
    %40 = tpu.concatenate %36, %37, %38, %39 in 0 : vector<1x8x8xf32>, vector<1x8x8xf32>, vector<1x8x8xf32>, vector<1x8x8xf32> -> vector<4x8x8xf32>
    %41 = arith.truncf %40 : vector<4x8x8xf32> to vector<4x8x8xbf16>
    "tpu.trace_start"() <{level = 10 : i32, message = "hqc,hkc->hqk"}> : () -> ()
    %cst_8 = arith.constant dense<0.000000e+00> : vector<4x8x8xf32>
    %42 = tpu.matmul %21, %31, %cst_8 {dimension_numbers = #tpu.dot_dimension_numbers<[2], [2], [1], [1], [0, 0, 0, 1, 1, 1], [0], [0]>} : vector<4x8x8xbf16>, vector<4x8x8xbf16>, vector<4x8x8xf32> -> vector<4x8x8xf32>
    "tpu.trace_stop"() : () -> ()
    %cst_9 = arith.constant 0.353553385 : f32
    %43 = vector.broadcast %cst_9 : f32 to vector<4x8x8xf32>
    %44 = arith.mulf %42, %43 : vector<4x8x8xf32>
    %c0_10 = arith.constant 0 : index
    %c0_11 = arith.constant 0 : index
    %c0_12 = arith.constant 0 : index
    %c0_13 = arith.constant 0 : index
    %45 = vector.load %arg17[%c0_10, %c0_11, %c0_12, %c0_13] : memref<1x1x4x8xf32, #tpu.memory_space<vmem>>, vector<1x1x4x8xf32>
    %46 = vector.shape_cast %45 : vector<1x1x4x8xf32> to vector<4x8xf32>
    %47 = vector.shape_cast %46 : vector<4x8xf32> to vector<4x8x1xf32>
    %48 = vector.broadcast %47 : vector<4x8x1xf32> to vector<4x8x8xf32>
    %49 = arith.addf %44, %48 : vector<4x8x8xf32>
    %c0_14 = arith.constant 0 : index
    %c0_15 = arith.constant 0 : index
    %c0_16 = arith.constant 0 : index
    %50 = vector.load %arg5[%c0_14, %c0_15, %c0_16] : memref<1x1x8xf32, #tpu.memory_space<vmem>>, vector<1x1x8xf32>
    %51 = vector.shape_cast %50 : vector<1x1x8xf32> to vector<1x8xf32>
    %52 = vector.shape_cast %51 : vector<1x8xf32> to vector<1x1x8xf32>
    %53 = vector.broadcast %52 : vector<1x1x8xf32> to vector<4x8x8xf32>
    %54 = arith.addf %49, %53 : vector<4x8x8xf32>
    %cst_17 = arith.constant dense<0xFF800000> : vector<4x8xf32>
    %55 = vector.multi_reduction <maximumf>, %54, %cst_17 [2] : vector<4x8x8xf32> to vector<4x8xf32>
    %56 = vector.shape_cast %55 : vector<4x8xf32> to vector<4x8x1xf32>
    %57 = vector.broadcast %56 : vector<4x8x1xf32> to vector<4x8x8xf32>
    %58 = arith.subf %54, %57 : vector<4x8x8xf32>
    %59 = math.exp %58 : vector<4x8x8xf32>
    %cst_18 = arith.constant dense<0.000000e+00> : vector<4x8xf32>
    %60 = vector.multi_reduction <add>, %59, %cst_18 [2] : vector<4x8x8xf32> to vector<4x8xf32>
    %61 = vector.shape_cast %60 : vector<4x8xf32> to vector<4x8x1xf32>
    %62 = tpu.reciprocal %61 {approx = true} : vector<4x8x1xf32> -> vector<4x8x1xf32>
    %63 = vector.broadcast %62 : vector<4x8x1xf32> to vector<4x8x8xf32>
    %64 = arith.mulf %59, %63 : vector<4x8x8xf32>
    %65 = arith.truncf %64 : vector<4x8x8xf32> to vector<4x8x8xbf16>
    "tpu.trace_start"() <{level = 10 : i32, message = "hqk,hkc->hqc"}> : () -> ()
    %cst_19 = arith.constant dense<0.000000e+00> : vector<4x8x8xf32>
    %66 = tpu.matmul %65, %41, %cst_19 {dimension_numbers = #tpu.dot_dimension_numbers<[2], [1], [1], [2], [0, 0, 0, 1, 1, 2], [0], [0]>} : vector<4x8x8xbf16>, vector<4x8x8xbf16>, vector<4x8x8xf32> -> vector<4x8x8xf32>
    "tpu.trace_stop"() : () -> ()
    %67 = vector.extract_strided_slice %66 {offsets = [0, 0, 0], sizes = [1, 8, 8], strides = [1, 1, 1]} : vector<4x8x8xf32> to vector<1x8x8xf32>
    %68 = vector.shape_cast %67 : vector<1x8x8xf32> to vector<8x8xf32>
    %69 = vector.extract_strided_slice %66 {offsets = [1, 0, 0], sizes = [1, 8, 8], strides = [1, 1, 1]} : vector<4x8x8xf32> to vector<1x8x8xf32>
    %70 = vector.shape_cast %69 : vector<1x8x8xf32> to vector<8x8xf32>
    %71 = vector.extract_strided_slice %66 {offsets = [2, 0, 0], sizes = [1, 8, 8], strides = [1, 1, 1]} : vector<4x8x8xf32> to vector<1x8x8xf32>
    %72 = vector.shape_cast %71 : vector<1x8x8xf32> to vector<8x8xf32>
    %73 = vector.extract_strided_slice %66 {offsets = [3, 0, 0], sizes = [1, 8, 8], strides = [1, 1, 1]} : vector<4x8x8xf32> to vector<1x8x8xf32>
    %74 = vector.shape_cast %73 : vector<1x8x8xf32> to vector<8x8xf32>
    %75 = tpu.concatenate %68, %70, %72, %74 in 1 : vector<8x8xf32>, vector<8x8xf32>, vector<8x8xf32>, vector<8x8xf32> -> vector<8x32xf32>
    %76 = arith.truncf %75 : vector<8x32xf32> to vector<8x32xbf16>
    %c0_20 = arith.constant 0 : index
    %c0_21 = arith.constant 0 : index
    %c0_22 = arith.constant 0 : index
    %77 = vector.load %arg15[%c0_20, %c0_21, %c0_22] : memref<1x32x32xbf16, #tpu.memory_space<vmem>>, vector<1x32x32xbf16>
    %78 = vector.shape_cast %77 : vector<1x32x32xbf16> to vector<32x32xbf16>
    %cst_23 = arith.constant dense<0.000000e+00> : vector<8x32xf32>
    %79 = tpu.matmul %76, %78, %cst_23 {dimension_numbers = #tpu.dot_dimension_numbers<[1], [0], [0], [1], [0, 0, 1, 1], [], []>} : vector<8x32xbf16>, vector<32x32xbf16>, vector<8x32xf32> -> vector<8x32xf32>
    %c0_24 = arith.constant 0 : index
    %c0_25 = arith.constant 0 : index
    %c0_26 = arith.constant 0 : index
    %80 = vector.load %arg16[%c0_24, %c0_25, %c0_26] : memref<1x1x32xf32, #tpu.memory_space<vmem>>, vector<1x1x32xf32>
    %81 = vector.shape_cast %80 : vector<1x1x32xf32> to vector<1x32xf32>
    %82 = vector.broadcast %81 : vector<1x32xf32> to vector<8x32xf32>
    %83 = arith.addf %79, %82 : vector<8x32xf32>
    %84 = arith.addf %3, %83 : vector<8x32xf32>
    %c0_27 = arith.constant 0 : index
    %c0_28 = arith.constant 0 : index
    %c0_29 = arith.constant 0 : index
    %85 = vector.load %arg18[%c0_27, %c0_28, %c0_29] : memref<1x1x32xf32, #tpu.memory_space<vmem>>, vector<1x1x32xf32>
    %86 = vector.shape_cast %85 : vector<1x1x32xf32> to vector<1x32xf32>
    %c0_30 = arith.constant 0 : index
    %c0_31 = arith.constant 0 : index
    %c0_32 = arith.constant 0 : index
    %87 = vector.load %arg19[%c0_30, %c0_31, %c0_32] : memref<1x1x32xf32, #tpu.memory_space<vmem>>, vector<1x1x32xf32>
    %88 = vector.shape_cast %87 : vector<1x1x32xf32> to vector<1x32xf32>
    %cst_33 = arith.constant dense<0.000000e+00> : vector<8xf32>
    %89 = vector.multi_reduction <add>, %84, %cst_33 [1] : vector<8x32xf32> to vector<8xf32>
    %90 = vector.shape_cast %89 : vector<8xf32> to vector<8x1xf32>
    %cst_34 = arith.constant 3.200000e+01 : f32
    %91 = vector.broadcast %cst_34 : f32 to vector<8x1xf32>
    %92 = arith.divf %90, %91 : vector<8x1xf32>
    %93 = vector.broadcast %92 : vector<8x1xf32> to vector<8x32xf32>
    %94 = arith.subf %84, %93 : vector<8x32xf32>
    %95 = arith.mulf %94, %94 : vector<8x32xf32>
    %cst_35 = arith.constant dense<0.000000e+00> : vector<8xf32>
    %96 = vector.multi_reduction <add>, %95, %cst_35 [1] : vector<8x32xf32> to vector<8xf32>
    %97 = vector.shape_cast %96 : vector<8xf32> to vector<8x1xf32>
    %cst_36 = arith.constant 3.200000e+01 : f32
    %98 = vector.broadcast %cst_36 : f32 to vector<8x1xf32>
    %99 = arith.divf %97, %98 : vector<8x1xf32>
    %100 = vector.broadcast %92 : vector<8x1xf32> to vector<8x32xf32>
    %101 = arith.subf %84, %100 : vector<8x32xf32>
    %cst_37 = arith.constant 9.99999974E-6 : f32
    %102 = vector.broadcast %cst_37 : f32 to vector<8x1xf32>
    %103 = arith.addf %99, %102 : vector<8x1xf32>
    %104 = math.rsqrt %103 : vector<8x1xf32>
    %105 = vector.broadcast %104 : vector<8x1xf32> to vector<8x32xf32>
    %106 = arith.mulf %101, %105 : vector<8x32xf32>
    %107 = vector.broadcast %86 : vector<1x32xf32> to vector<8x32xf32>
    %108 = arith.mulf %106, %107 : vector<8x32xf32>
    %109 = vector.broadcast %88 : vector<1x32xf32> to vector<8x32xf32>
    %110 = arith.addf %108, %109 : vector<8x32xf32>
    %111 = arith.truncf %110 : vector<8x32xf32> to vector<8x32xbf16>
    %c0_38 = arith.constant 0 : index
    %c0_39 = arith.constant 0 : index
    %c0_40 = arith.constant 0 : index
    %112 = vector.load %arg22[%c0_38, %c0_39, %c0_40] : memref<1x32x64xbf16, #tpu.memory_space<vmem>>, vector<1x32x64xbf16>
    %113 = vector.shape_cast %112 : vector<1x32x64xbf16> to vector<32x64xbf16>
    %cst_41 = arith.constant dense<0.000000e+00> : vector<8x64xf32>
    %114 = tpu.matmul %111, %113, %cst_41 {dimension_numbers = #tpu.dot_dimension_numbers<[1], [0], [0], [1], [0, 0, 1, 1], [], []>} : vector<8x32xbf16>, vector<32x64xbf16>, vector<8x64xf32> -> vector<8x64xf32>
    %c0_42 = arith.constant 0 : index
    %c0_43 = arith.constant 0 : index
    %c0_44 = arith.constant 0 : index
    %115 = vector.load %arg23[%c0_42, %c0_43, %c0_44] : memref<1x1x64xf32, #tpu.memory_space<vmem>>, vector<1x1x64xf32>
    %116 = vector.shape_cast %115 : vector<1x1x64xf32> to vector<1x64xf32>
    %117 = vector.broadcast %116 : vector<1x64xf32> to vector<8x64xf32>
    %118 = arith.addf %114, %117 : vector<8x64xf32>
    %cst_45 = arith.constant 0.000000e+00 : f32
    %119 = vector.broadcast %cst_45 : f32 to vector<8x64xf32>
    %120 = arith.maximumf %118, %119 : vector<8x64xf32>
    %121 = arith.truncf %120 : vector<8x64xf32> to vector<8x64xbf16>
    %c0_46 = arith.constant 0 : index
    %c0_47 = arith.constant 0 : index
    %c0_48 = arith.constant 0 : index
    %122 = vector.load %arg24[%c0_46, %c0_47, %c0_48] : memref<1x64x32xbf16, #tpu.memory_space<vmem>>, vector<1x64x32xbf16>
    %123 = vector.shape_cast %122 : vector<1x64x32xbf16> to vector<64x32xbf16>
    %cst_49 = arith.constant dense<0.000000e+00> : vector<8x32xf32>
    %124 = tpu.matmul %121, %123, %cst_49 {dimension_numbers = #tpu.dot_dimension_numbers<[1], [0], [0], [1], [0, 0, 1, 1], [], []>} : vector<8x64xbf16>, vector<64x32xbf16>, vector<8x32xf32> -> vector<8x32xf32>
    %c0_50 = arith.constant 0 : index
    %c0_51 = arith.constant 0 : index
    %c0_52 = arith.constant 0 : index
    %125 = vector.load %arg25[%c0_50, %c0_51, %c0_52] : memref<1x1x32xf32, #tpu.memory_space<vmem>>, vector<1x1x32xf32>
    %126 = vector.shape_cast %125 : vector<1x1x32xf32> to vector<1x32xf32>
    %127 = vector.broadcast %126 : vector<1x32xf32> to vector<8x32xf32>
    %128 = arith.addf %124, %127 : vector<8x32xf32>
    %129 = arith.addf %110, %128 : vector<8x32xf32>
    %c0_53 = arith.constant 0 : index
    %c0_54 = arith.constant 0 : index
    %c0_55 = arith.constant 0 : index
    %130 = vector.load %arg20[%c0_53, %c0_54, %c0_55] : memref<1x1x32xf32, #tpu.memory_space<vmem>>, vector<1x1x32xf32>
    %131 = vector.shape_cast %130 : vector<1x1x32xf32> to vector<1x32xf32>
    %c0_56 = arith.constant 0 : index
    %c0_57 = arith.constant 0 : index
    %c0_58 = arith.constant 0 : index
    %132 = vector.load %arg21[%c0_56, %c0_57, %c0_58] : memref<1x1x32xf32, #tpu.memory_space<vmem>>, vector<1x1x32xf32>
    %133 = vector.shape_cast %132 : vector<1x1x32xf32> to vector<1x32xf32>
    %cst_59 = arith.constant dense<0.000000e+00> : vector<8xf32>
    %134 = vector.multi_reduction <add>, %129, %cst_59 [1] : vector<8x32xf32> to vector<8xf32>
    %135 = vector.shape_cast %134 : vector<8xf32> to vector<8x1xf32>
    %cst_60 = arith.constant 3.200000e+01 : f32
    %136 = vector.broadcast %cst_60 : f32 to vector<8x1xf32>
    %137 = arith.divf %135, %136 : vector<8x1xf32>
    %138 = vector.broadcast %137 : vector<8x1xf32> to vector<8x32xf32>
    %139 = arith.subf %129, %138 : vector<8x32xf32>
    %140 = arith.mulf %139, %139 : vector<8x32xf32>
    %cst_61 = arith.constant dense<0.000000e+00> : vector<8xf32>
    %141 = vector.multi_reduction <add>, %140, %cst_61 [1] : vector<8x32xf32> to vector<8xf32>
    %142 = vector.shape_cast %141 : vector<8xf32> to vector<8x1xf32>
    %cst_62 = arith.constant 3.200000e+01 : f32
    %143 = vector.broadcast %cst_62 : f32 to vector<8x1xf32>
    %144 = arith.divf %142, %143 : vector<8x1xf32>
    %145 = vector.broadcast %137 : vector<8x1xf32> to vector<8x32xf32>
    %146 = arith.subf %129, %145 : vector<8x32xf32>
    %cst_63 = arith.constant 9.99999974E-6 : f32
    %147 = vector.broadcast %cst_63 : f32 to vector<8x1xf32>
    %148 = arith.addf %144, %147 : vector<8x1xf32>
    %149 = math.rsqrt %148 : vector<8x1xf32>
    %150 = vector.broadcast %149 : vector<8x1xf32> to vector<8x32xf32>
    %151 = arith.mulf %146, %150 : vector<8x32xf32>
    %152 = vector.broadcast %131 : vector<1x32xf32> to vector<8x32xf32>
    %153 = arith.mulf %151, %152 : vector<8x32xf32>
    %154 = vector.broadcast %133 : vector<1x32xf32> to vector<8x32xf32>
    %155 = arith.addf %153, %154 : vector<8x32xf32>
    %c0_64 = arith.constant 0 : index
    %c0_65 = arith.constant 0 : index
    %156 = vector.load %arg31[%c0_64, %c0_65] : memref<8x32xf32, #tpu.memory_space<vmem>>, vector<8x32xf32>
    tpu.vector_store %arg31[%c0_64, %c0_65], %155 {strides = array<i32>} : memref<8x32xf32, #tpu.memory_space<vmem>>, vector<8x32xf32>,
    %c1_i32 = arith.constant 1 : i32
    %157 = arith.cmpi eq, %arg1, %c1_i32 : i32
    %158 = arith.extui %157 : i1 to i32
    %c0_i32_66 = arith.constant 0 : i32
    %159 = arith.cmpi ne, %158, %c0_i32_66 : i32
    scf.if %159 {
      %c0_67 = arith.constant 0 : index
      %c0_68 = arith.constant 0 : index
      %160 = vector.load %arg26[%c0_67, %c0_68] : memref<1x32xf32, #tpu.memory_space<vmem>>, vector<1x32xf32>
      %c0_69 = arith.constant 0 : index
      %c0_70 = arith.constant 0 : index
      %161 = vector.load %arg27[%c0_69, %c0_70] : memref<1x32xf32, #tpu.memory_space<vmem>>, vector<1x32xf32>
      %cst_71 = arith.constant dense<0.000000e+00> : vector<8xf32>
      %162 = vector.multi_reduction <add>, %155, %cst_71 [1] : vector<8x32xf32> to vector<8xf32>
      %163 = vector.shape_cast %162 : vector<8xf32> to vector<8x1xf32>
      %cst_72 = arith.constant 3.200000e+01 : f32
      %164 = vector.broadcast %cst_72 : f32 to vector<8x1xf32>
      %165 = arith.divf %163, %164 : vector<8x1xf32>
      %166 = vector.broadcast %165 : vector<8x1xf32> to vector<8x32xf32>
      %167 = arith.subf %155, %166 : vector<8x32xf32>
      %168 = arith.mulf %167, %167 : vector<8x32xf32>
      %cst_73 = arith.constant dense<0.000000e+00> : vector<8xf32>
      %169 = vector.multi_reduction <add>, %168, %cst_73 [1] : vector<8x32xf32> to vector<8xf32>
      %170 = vector.shape_cast %169 : vector<8xf32> to vector<8x1xf32>
      %cst_74 = arith.constant 3.200000e+01 : f32
      %171 = vector.broadcast %cst_74 : f32 to vector<8x1xf32>
      %172 = arith.divf %170, %171 : vector<8x1xf32>
      %173 = vector.broadcast %165 : vector<8x1xf32> to vector<8x32xf32>
      %174 = arith.subf %155, %173 : vector<8x32xf32>
      %cst_75 = arith.constant 9.99999974E-6 : f32
      %175 = vector.broadcast %cst_75 : f32 to vector<8x1xf32>
      %176 = arith.addf %172, %175 : vector<8x1xf32>
      %177 = math.rsqrt %176 : vector<8x1xf32>
      %178 = vector.broadcast %177 : vector<8x1xf32> to vector<8x32xf32>
      %179 = arith.mulf %174, %178 : vector<8x32xf32>
      %180 = vector.broadcast %160 : vector<1x32xf32> to vector<8x32xf32>
      %181 = arith.mulf %179, %180 : vector<8x32xf32>
      %182 = vector.broadcast %161 : vector<1x32xf32> to vector<8x32xf32>
      %183 = arith.addf %181, %182 : vector<8x32xf32>
      %184 = arith.truncf %183 : vector<8x32xf32> to vector<8x32xbf16>
      %c0_76 = arith.constant 0 : index
      %c0_77 = arith.constant 0 : index
      %185 = vector.load %arg28[%c0_76, %c0_77] : memref<32x32xbf16, #tpu.memory_space<vmem>>, vector<32x32xbf16>
      %cst_78 = arith.constant dense<0.000000e+00> : vector<8x32xf32>
      %186 = tpu.matmul %184, %185, %cst_78 {dimension_numbers = #tpu.dot_dimension_numbers<[1], [0], [0], [1], [0, 0, 1, 1], [], []>} : vector<8x32xbf16>, vector<32x32xbf16>, vector<8x32xf32> -> vector<8x32xf32>
      %c0_79 = arith.constant 0 : index
      %c0_80 = arith.constant 0 : index
      %c0_81 = arith.constant 0 : index
      %187 = vector.load %arg29[%c0_79, %c0_80, %c0_81] : memref<1x8x32xf32, #tpu.memory_space<vmem>>, vector<1x8x32xf32>
      %188 = vector.shape_cast %187 : vector<1x8x32xf32> to vector<8x32xf32>
      %189 = arith.addf %186, %188 : vector<8x32xf32>
      %190 = arith.negf %189 : vector<8x32xf32>
      %191 = math.exp %190 : vector<8x32xf32>
      %cst_82 = arith.constant 1.000000e+00 : f32
      %192 = vector.broadcast %cst_82 : f32 to vector<8x32xf32>
      %193 = arith.addf %192, %191 : vector<8x32xf32>
      %194 = arith.divf %192, %193 : vector<8x32xf32>
      %195 = arith.mulf %183, %194 : vector<8x32xf32>
      %196 = arith.truncf %195 : vector<8x32xf32> to vector<8x32xbf16>
      %c0_83 = arith.constant 0 : index
      %c0_84 = arith.constant 0 : index
      %c0_85 = arith.constant 0 : index
      %197 = vector.load %arg30[%c0_83, %c0_84, %c0_85] : memref<1x8x32xbf16, #tpu.memory_space<vmem>>, vector<1x8x32xbf16>
      %198 = vector.shape_cast %197 : vector<1x8x32xbf16> to vector<8x32xbf16>
      %199 = vector.shape_cast %196 : vector<8x32xbf16> to vector<1x8x32xbf16>
      tpu.vector_store %arg30[%c0_83, %c0_84, %c0_85], %199 {strides = array<i32>} : memref<1x8x32xbf16, #tpu.memory_space<vmem>>, vector<1x8x32xbf16>,
    } else {
    }
    return
  }
  func.func @transform_0(%arg0: i32, %arg1: i32) -> (i32, i32, i32) {
    %c0_i32 = arith.constant 0 : i32
    %c0_i32_0 = arith.constant 0 : i32
    %c0_i32_1 = arith.constant 0 : i32
    return %arg0, %c0_i32, %c0_i32_0 : i32, i32, i32
  }
  func.func @transform_1(%arg0: i32, %arg1: i32) -> (i32, i32, i32) {
    %c0_i32 = arith.constant 0 : i32
    %c0_i32_0 = arith.constant 0 : i32
    %c0_i32_1 = arith.constant 0 : i32
    return %arg0, %c0_i32, %c0_i32_0 : i32, i32, i32
  }
  func.func @transform_2(%arg0: i32, %arg1: i32) -> (i32, i32) {
    %c0_i32 = arith.constant 0 : i32
    %c0_i32_0 = arith.constant 0 : i32
    %c0_i32_1 = arith.constant 0 : i32
    return %c0_i32, %c0_i32_0 : i32, i32
  }
  func.func @transform_3(%arg0: i32, %arg1: i32) -> (i32, i32, i32) {
    %c0_i32 = arith.constant 0 : i32
    %c0_i32_0 = arith.constant 0 : i32
    %c0_i32_1 = arith.constant 0 : i32
    return %arg0, %c0_i32, %c0_i32_0 : i32, i32, i32
  }
  func.func @transform_4(%arg0: i32, %arg1: i32) -> (i32, i32) {
    %c0_i32 = arith.constant 0 : i32
    %c0_i32_0 = arith.constant 0 : i32
    %c0_i32_1 = arith.constant 0 : i32
    return %c0_i32, %c0_i32_0 : i32, i32
  }
  func.func @transform_5(%arg0: i32, %arg1: i32) -> (i32, i32) {
    %c0_i32 = arith.constant 0 : i32
    %c0_i32_0 = arith.constant 0 : i32
    %c0_i32_1 = arith.constant 0 : i32
    return %c0_i32, %c0_i32_0 : i32, i32
  }
  func.func @transform_6(%arg0: i32, %arg1: i32) -> (i32, i32) {
    %c0_i32 = arith.constant 0 : i32
    %c0_i32_0 = arith.constant 0 : i32
    %c0_i32_1 = arith.constant 0 : i32
    return %c0_i32, %c0_i32_0 : i32, i32
  }
  func.func @transform_7(%arg0: i32, %arg1: i32) -> (i32, i32) {
    %c0_i32 = arith.constant 0 : i32
    %c0_i32_0 = arith.constant 0 : i32
    %c0_i32_1 = arith.constant 0 : i32
    return %c0_i32, %c0_i32_0 : i32, i32
  }
  func.func @transform_8(%arg0: i32, %arg1: i32) -> (i32, i32) {
    %c0_i32 = arith.constant 0 : i32
    %c0_i32_0 = arith.constant 0 : i32
    %c0_i32_1 = arith.constant 0 : i32
    return %c0_i32, %c0_i32_0 : i32, i32
  }
  func.func @transform_9(%arg0: i32, %arg1: i32) -> (i32, i32) {
    %c0_i32 = arith.constant 0 : i32
    %c0_i32_0 = arith.constant 0 : i32
    %c0_i32_1 = arith.constant 0 : i32
    return %c0_i32, %c0_i32_0 : i32, i32
  }
  func.func @transform_10(%arg0: i32, %arg1: i32) -> (i32, i32) {
    %c0_i32 = arith.constant 0 : i32
    %c0_i32_0 = arith.constant 0 : i32
    %c0_i32_1 = arith.constant 0 : i32
    return %c0_i32, %c0_i32_0 : i32, i32
  }
  func.func @transform_11(%arg0: i32, %arg1: i32) -> (i32, i32, i32) {
    %c0_i32 = arith.constant 0 : i32
    %c0_i32_0 = arith.constant 0 : i32
    %c0_i32_1 = arith.constant 0 : i32
    return %arg1, %c0_i32, %c0_i32_0 : i32, i32, i32
  }
  func.func @transform_12(%arg0: i32, %arg1: i32) -> (i32, i32, i32) {
    %c0_i32 = arith.constant 0 : i32
    %c0_i32_0 = arith.constant 0 : i32
    %c0_i32_1 = arith.constant 0 : i32
    return %arg1, %c0_i32, %c0_i32_0 : i32, i32, i32
  }
  func.func @transform_13(%arg0: i32, %arg1: i32) -> (i32, i32, i32) {
    %c0_i32 = arith.constant 0 : i32
    %c0_i32_0 = arith.constant 0 : i32
    %c0_i32_1 = arith.constant 0 : i32
    return %arg1, %c0_i32, %c0_i32_0 : i32, i32, i32
  }
  func.func @transform_14(%arg0: i32, %arg1: i32) -> (i32, i32, i32) {
    %c0_i32 = arith.constant 0 : i32
    %c0_i32_0 = arith.constant 0 : i32
    %c0_i32_1 = arith.constant 0 : i32
    return %arg1, %c0_i32, %c0_i32_0 : i32, i32, i32
  }
  func.func @transform_15(%arg0: i32, %arg1: i32) -> (i32, i32, i32, i32) {
    %c0_i32 = arith.constant 0 : i32
    %c0_i32_0 = arith.constant 0 : i32
    %c0_i32_1 = arith.constant 0 : i32
    return %arg1, %arg0, %c0_i32, %c0_i32_0 : i32, i32, i32, i32
  }
  func.func @transform_16(%arg0: i32, %arg1: i32) -> (i32, i32, i32) {
    %c0_i32 = arith.constant 0 : i32
    %c0_i32_0 = arith.constant 0 : i32
    %c0_i32_1 = arith.constant 0 : i32
    return %arg1, %c0_i32, %c0_i32_0 : i32, i32, i32
  }
  func.func @transform_17(%arg0: i32, %arg1: i32) -> (i32, i32, i32) {
    %c0_i32 = arith.constant 0 : i32
    %c0_i32_0 = arith.constant 0 : i32
    %c0_i32_1 = arith.constant 0 : i32
    return %arg1, %c0_i32, %c0_i32_0 : i32, i32, i32
  }
  func.func @transform_18(%arg0: i32, %arg1: i32) -> (i32, i32, i32) {
    %c0_i32 = arith.constant 0 : i32
    %c0_i32_0 = arith.constant 0 : i32
    %c0_i32_1 = arith.constant 0 : i32
    return %arg1, %c0_i32, %c0_i32_0 : i32, i32, i32
  }
  func.func @transform_19(%arg0: i32, %arg1: i32) -> (i32, i32, i32) {
    %c0_i32 = arith.constant 0 : i32
    %c0_i32_0 = arith.constant 0 : i32
    %c0_i32_1 = arith.constant 0 : i32
    return %arg1, %c0_i32, %c0_i32_0 : i32, i32, i32
  }
  func.func @transform_20(%arg0: i32, %arg1: i32) -> (i32, i32, i32) {
    %c0_i32 = arith.constant 0 : i32
    %c0_i32_0 = arith.constant 0 : i32
    %c0_i32_1 = arith.constant 0 : i32
    return %arg1, %c0_i32, %c0_i32_0 : i32, i32, i32
  }
  func.func @transform_21(%arg0: i32, %arg1: i32) -> (i32, i32, i32) {
    %c0_i32 = arith.constant 0 : i32
    %c0_i32_0 = arith.constant 0 : i32
    %c0_i32_1 = arith.constant 0 : i32
    return %arg1, %c0_i32, %c0_i32_0 : i32, i32, i32
  }
  func.func @transform_22(%arg0: i32, %arg1: i32) -> (i32, i32, i32) {
    %c0_i32 = arith.constant 0 : i32
    %c0_i32_0 = arith.constant 0 : i32
    %c0_i32_1 = arith.constant 0 : i32
    return %arg1, %c0_i32, %c0_i32_0 : i32, i32, i32
  }
  func.func @transform_23(%arg0: i32, %arg1: i32) -> (i32, i32, i32) {
    %c0_i32 = arith.constant 0 : i32
    %c0_i32_0 = arith.constant 0 : i32
    %c0_i32_1 = arith.constant 0 : i32
    return %arg1, %c0_i32, %c0_i32_0 : i32, i32, i32
  }
  func.func @transform_24(%arg0: i32, %arg1: i32) -> (i32, i32) {
    %c0_i32 = arith.constant 0 : i32
    %c0_i32_0 = arith.constant 0 : i32
    %c0_i32_1 = arith.constant 0 : i32
    return %c0_i32, %c0_i32_0 : i32, i32
  }
  func.func @transform_25(%arg0: i32, %arg1: i32) -> (i32, i32) {
    %c0_i32 = arith.constant 0 : i32
    %c0_i32_0 = arith.constant 0 : i32
    %c0_i32_1 = arith.constant 0 : i32
    return %c0_i32, %c0_i32_0 : i32, i32
  }
  func.func @transform_26(%arg0: i32, %arg1: i32) -> (i32, i32) {
    %c0_i32 = arith.constant 0 : i32
    %c0_i32_0 = arith.constant 0 : i32
    %c0_i32_1 = arith.constant 0 : i32
    return %c0_i32, %c0_i32_0 : i32, i32
  }
  func.func @transform_27(%arg0: i32, %arg1: i32) -> (i32, i32, i32) {
    %c0_i32 = arith.constant 0 : i32
    %c0_i32_0 = arith.constant 0 : i32
    %c0_i32_1 = arith.constant 0 : i32
    return %arg0, %c0_i32, %c0_i32_0 : i32, i32, i32
  }
  func.func @transform_28(%arg0: i32, %arg1: i32) -> (i32, i32, i32) {
    %c0_i32 = arith.constant 0 : i32
    %c0_i32_0 = arith.constant 0 : i32
    %c0_i32_1 = arith.constant 0 : i32
    return %arg0, %c0_i32, %c0_i32_0 : i32, i32, i32
  }
}

</mosaic_0001>

<bundles_post_ra>
// kernel: _lambda_.3
= control target key start
LH: loop header
LB: loop body
LE: loop exit
PB: predicated region body
PF: predicated region fallthrough
CT: control target
= control target key end

     0   :  { %v157_v1 = vmov 0.0   ;;  %vm158_vm0 = vmmov 0   ;;  %s206_s0 = inlined_call_operand.vmem [shape: bf16[16,32], index: 0, kind: input, shape index: {}]   ;;  %s207_s1 = inlined_call_operand.vmem [shape: bf16[32,128], index: 1, kind: input, shape index: {}]   ;;  %s208_s2 = inlined_call_operand.vmem [shape: f32[1,128], index: 2, kind: input, shape index: {}]   ;;  %s209_s3 = inlined_call_operand.hbm [shape: f32[16,128], index: 3, kind: output, shape index: {}]  }
   0x1   :  { %v130_v0 = vld [vmem:[%s207_s1] sm:$0xff]   ;;  %117 = vmatprep.subr.bf16.mxu0 %v157_v1  ;;  %v131_v2 = vld [vmem:[%s207_s1 + $0x8] sm:$0xff]   ;;  %121 = vmatprep.mubr.msk.bf16.mxu0 %vm158_vm0, %v157_v1 }
   0x2   :  { %118 = vmatpush3.bf16.msra.mxu0 %v130_v0 }
   0x3   :  { %119 = vmatprep.subr.bf16.mxu0 %v157_v1 }
   0x4   :  { %8 = vsyncpa [#allocation3], 0  ;;  %v132_v3 = vld [vmem:[%s206_s0] sm:$0xff]   ;;  %vm46_vm1 = vcmask 261120   ;;  %s159_s20 = smov [#allocation2]  }
   0x5   :  { %v109_v4 = vld [vmem:[%s208_s2] ss:$0 sm:$0xff]  ;;  %s98_s21 = sshll.u32 %s159_s20, 4  ;;  %s99_s21 = int_to_ptr.vmem [resolvable:$true] %s98_s21 }
   0x6   :  { %120 = vmatpush3.bf16.msra.mxu0 %v131_v2  ;;  %s133_s1 = scalar_lea.vmem %s99_s21, 256  ;;  %p138_p1 = scmp.lt.s32.totalorder %s99_s21, %s99_s21 }
   0x7   :  { %p134_p0 = scmp.ne.s32.totalorder %s99_s21, %s133_s1  ;;  %p139_p2 = scmp.lt.s32.totalorder %s133_s1, %s133_s1 }
   0x9   :  { %122 = vmatmul.mubr.msk.bf16.vlgmr.msra.gmra.mrb[0].mxu0 %vm46_vm1, %v132_v3  ;;  %p140_p3 = por %p139_p2, %p138_p1 }
   0xb   :  { %p141_p4 = pnand %p140_p3, %p134_p0 }
  0xdc   :  { %v84_v5 = vpop.f32.mrb[0].mxu0 }
  0xdd   :  { %v85_v6 = vadd.f32 %v109_v4, %v84_v5  ;;  %v123_v7 = vpop.f32.mrb[1].mxu0 }
  0xde   :  { %v87_v8 = vpop.f32.mrb[2].mxu0 }
  0xdf   :  { %91 = vst [vmem:[#allocation2] sm:$0xff] %v85_v6  ;;  %v88_v9 = vadd.f32 %v109_v4, %v87_v8  ;;  %v124_v10 = vpop.f32.mrb[3].mxu0 }
  0xe1   :  { %92 = vst [vmem:[#allocation2 + $0x8] sm:$0xff] %v88_v9 }
  0xe2   :  { %144 = shalt.err (!%p141_p4)
}
  0xe3   :  { %s145_s22 = scalar_lea.hbm %s209_s3, 256 }
  0xe4   :  { %p146_p5 = scmp.ne.s32.totalorder %s209_s3, %s145_s22  ;;  %p149_p6 = scmp.lt.u32.totalorder %s145_s22, %s209_s3 }
  0xe6   :  { %p151_p7 = pnand %p149_p6, %p146_p5 }
  0xe8   :  { %154 = shalt.err (!%p151_p7)
}
  0xe9   :  { %s160_s27 = smov 128   ;;  %s161_s28 = smov 8  }
  0xea   :  { %104 = dma.vmem_to_hbm [thread:$0]  %s99_s21, 256, %s209_s3, [#allocation3], %s160_s27, %s160_s27, %s161_s28  }
  0xeb   :  { %155 = dma.done.wait [#allocation3], 256  }
  0xec   :  { %156 = vsyncadd [#allocation3], 4294967040 }
  0xed   :  { %108 = vsyncpa [#allocation3], 1 }

// kernel: _lambda_.2
= control target key start
LH: loop header
LB: loop body
LE: loop exit
PB: predicated region body
PF: predicated region fallthrough
CT: control target
= control target key end

     0   :  { %s3144_s30 = smov 0   ;;  %s3506_s0 = inlined_call_operand.vmem [shape: bf16[2,8,32], index: 0, kind: input, shape index: {}]   ;;  %s3507_s1 = inlined_call_operand.vmem [shape: bf16[2,8,16], index: 1, kind: input, shape index: {}]   ;;  %s3508_s2 = inlined_call_operand.vmem [shape: f32[8,32], index: 2, kind: input, shape index: {}]   ;;  %s3509_s3 = inlined_call_operand.vmem [shape: f32[2,1,8], index: 3, kind: input, shape index: {}]   ;;  %s3510_s4 = inlined_call_operand.vmem [shape: bf16[16,32], index: 4, kind: input, shape index: {}]   ;;  %s3511_s5 = inlined_call_operand.vmem [shape: f32[1,32], index: 5, kind: input, shape index: {}]   ;;  %s3512_s6 = inlined_call_operand.vmem [shape: bf16[32,32], index: 6, kind: input, shape index: {}]   ;;  %s3513_s7 = inlined_call_operand.vmem [shape: f32[1,32], index: 7, kind: input, shape index: {}]   ;;  %s3514_s8 = inlined_call_operand.vmem [shape: bf16[32,32], index: 8, kind: input, shape index: {}]   ;;  %s3515_s9 = inlined_call_operand.vmem [shape: bf16[32,32], index: 9, kind: input, shape index: {}]   ;;  %s3516_s10 = inlined_call_operand.vmem [shape: f32[1,32], index: 10, kind: input, shape index: {}]   ;;  %s3517_s11 = inlined_call_operand.vmem [shape: bf16[2,32,96], index: 11, kind: input, shape index: {}]   ;;  %s3518_s12 = inlined_call_operand.vmem [shape: f32[2,1,96], index: 12, kind: input, shape index: {}]   ;;  %s3519_s13 = inlined_call_operand.vmem [shape: bf16[2,32,32], index: 13, kind: input, shape index: {}]   ;;  %s3520_s14 = inlined_call_operand.vmem [shape: f32[2,1,32], index: 14, kind: input, shape index: {}]   ;;  %s3521_s15 = inlined_call_operand.vmem [shape: f32[2,2,4,8], index: 15, kind: input, shape index: {}]   ;;  %s3522_s16 = inlined_call_operand.vmem [shape: f32[2,1,32], index: 16, kind: input, shape index: {}]   ;;  %s3523_s17 = inlined_call_operand.vmem [shape: f32[2,1,32], index: 17, kind: input, shape index: {}]   ;;  %s3524_s18 = inlined_call_operand.vmem [shape: f32[2,1,32], index: 18, kind: input, shape index: {}]   ;;  %s3525_s19 = inlined_call_operand.vmem [shape: f32[2,1,32], index: 19, kind: input, shape index: {}]   ;;  %s3526_s20 = inlined_call_operand.vmem [shape: bf16[2,32,64], index: 20, kind: input, shape index: {}]   ;;  %s3527_s21 = inlined_call_operand.vmem [shape: f32[2,1,64], index: 21, kind: input, shape index: {}]   ;;  %s3528_s22 = inlined_call_operand.vmem [shape: bf16[2,64,32], index: 22, kind: input, shape index: {}]   ;;  %s3529_s23 = inlined_call_operand.vmem [shape: f32[2,1,32], index: 23, kind: input, shape index: {}]   ;;  %s3530_s24 = inlined_call_operand.vmem [shape: f32[1,32], index: 24, kind: input, shape index: {}]   ;;  %s3531_s25 = inlined_call_operand.vmem [shape: f32[1,32], index: 25, kind: input, shape index: {}]   ;;  %s3532_s26 = inlined_call_operand.vmem [shape: bf16[32,32], index: 26, kind: input, shape index: {}]   ;;  %s3533_s27 = inlined_call_operand.vmem [shape: f32[2,8,32], index: 27, kind: input, shape index: {}]   ;;  %s3534_s28 = inlined_call_operand.vmem [shape: bf16[2,8,32], index: 28, kind: output, shape index: {}]  }
   0x1   :  { %3544 = sst [smem:[#allocation10_spill]] %s3506_s0 }
   0x2   :  { %3545 = sst [smem:[#allocation11_spill]] %s3507_s1 }
   0x3   :  { %3546 = sst [smem:[#allocation12_spill]] %s3508_s2 }
   0x4   :  { %3547 = sst [smem:[#allocation13_spill]] %s3509_s3  ;;  %s3146_s3 = smov 0  }
   0x5   :  { %3548 = sst [smem:[#allocation14_spill]] %s3510_s4 }
   0x6   :  { %3549 = sst [smem:[#allocation15_spill]] %s3511_s5  ;;  %s3140_s5 = smov 0  }
   0x7   :  { %3550 = sst [smem:[#allocation16_spill]] %s3512_s6 }
   0x8   :  { %3551 = sst [smem:[#allocation17_spill]] %s3513_s7 }
   0x9   :  { %3552 = sst [smem:[#allocation18_spill]] %s3514_s8  ;;  %s3138_s8 = smov 0  }
   0xa   :  { %3553 = sst [smem:[#allocation19_spill]] %s3515_s9  ;;  %s3142_s9 = smov 0  }
   0xb   :  { %3554 = sst [smem:[#allocation20_spill]] %s3516_s10 }
   0xc   :  { %3555 = sst [smem:[#allocation21_spill]] %s3517_s11 }
   0xd   :  { %3556 = sst [smem:[#allocation22_spill]] %s3518_s12 }
   0xe   :  { %3557 = sst [smem:[#allocation23_spill]] %s3519_s13 }
   0xf   :  { %3558 = sst [smem:[#allocation24_spill]] %s3520_s14 }
  0x10   :  { %3559 = sst [smem:[#allocation25_spill]] %s3521_s15 }
  0x11   :  { %3560 = sst [smem:[#allocation26_spill]] %s3525_s19 }
  0x12   :  { %3561 = sst [smem:[#allocation27_spill]] %s3526_s20 }
  0x13   :  { %3562 = sst [smem:[#allocation28_spill]] %s3529_s23 }
  0x14   :  { %3563 = sst [smem:[#allocation29_spill]] %s3530_s24 }
  0x15   :  { %3564 = sst [smem:[#allocation30_spill]] %s3531_s25 }
  0x16   :  { %3565 = sst [smem:[#allocation31_spill]] %s3532_s26 }
  0x17   :  { %3566 = sst [smem:[#allocation32_spill]] %s3533_s27 }
  0x18   :  { %3567 = sst [smem:[#allocation33_spill]] %s3534_s28 }
  0x19 LB: > { %3568 = sst [smem:[#allocation3_spill]] %s2961_s8  ;;  %s47_s6 = sadd.s32 1, %s2969_s9  ;;  %s2977_s3 = sphi %s3146_s3, %s38_s3   ;;  %s2973_s30 = sphi %s3144_s30, %s3622_s30   ;;  %s2969_s9 = sphi %s3142_s9, %s3621_s9   ;;  %s2965_s5 = sphi %s3140_s5, %s3620_s5   ;;  %s2961_s8 = sphi %s3138_s8, %s3619_s8  }
  0x1a   : > { %3569 = sst [smem:[#allocation4_spill]] %s2969_s9  ;;  %s50_s10 = sadd.s32 1, %s2973_s30 }
  0x1b   : > { %3570 = sst [smem:[#allocation5_spill]] %s2973_s30  ;;  %p48_p0 = scmp.ge.s32.totalorder %s47_s6, 2 }
  0x1c   : > { %3571 = sst [smem:[#allocation6_spill]] %s2977_s3  ;;  %p2600_p1 = scmp.ge.s32.totalorder %s2977_s3, 1 }
  0x1d   : > { %p918_p2 = scmp.lt.s32.totalorder %s2977_s3, 5  ;;  %s3624_s6 = smov (%p48_p0, %s47_s6), 0 }
  0x1e   : > { %3572 = sst [smem:[#allocation7_spill]] %s3624_s6  ;;  %s3626_s10 = smov (!%p48_p0, %s50_s10), %s2973_s30 }
  0x1f   : > { %p919_p3 = pnand %p2600_p1, %p918_p2  ;;  %p52_p4 = scmp.ge.s32.totalorder %s3626_s10, 2 }
  0x21   : > { %s3628_s10 = smov (%p52_p4, %s3626_s10), 0  ;;  %922 = sbr.rel (%p919_p3) target bundleno = 3899 (0xf3b), region = 132 }
  0x22   : > { %3573 = sst [smem:[#allocation8_spill]] %s3628_s10 }
  0x28   : > { %p1053_p5 = scmp.lt.s32.totalorder %s2965_s5, 1  ;;  %p1064_p6 = scmp.lt.s32.totalorder %s2961_s8, 1 }
  0x29   : > { %s3576_s3 = sld [smem:[#allocation11_spill]]  ;;  %s3578_s23 = sld [smem:[#allocation21_spill]] }
  0x2a   : > { %s3630_s5 = smov (!%p1053_p5, %s2965_s5), 1  ;;  %s3579_s13 = sld [smem:[#allocation23_spill]] }
  0x2b   : > { %s3174_s0 = scalar_select %p1064_p6, %s2961_s8, 1 }
  0x2c   : > { %s3177_s11 = sshll.u32 %s3630_s5, 2  ;;  %s3582_s15 = sld [smem:[#allocation25_spill]] }
  0x2d   : > { %s2670_s24 = sshll.u32 %s3174_s0, 4  ;;  %s2607_s4 = sshll.u32 %s3174_s0, 1 }
  0x2e   : > { %s1085_s26 = sadd.s32 %s2607_s4, %s3630_s5  ;;  %s3584_s20 = sld [smem:[#allocation27_spill]] }
  0x2f   : > { %s1060_s25 = scalar_lea.vmem %s3576_s3, %s3177_s11  ;;  %s3199_s7 = scalar_lea.vmem %s3578_s23, %s2670_s24 }
  0x30   : > { %s3204_s10 = scalar_lea.vmem %s3579_s13, %s2670_s24  ;;  %s2608_s2 = sshll.u32 %s1085_s26, 2 }
  0x31   : > { %3580 = sst [smem:[#allocation9_spill]] %s3204_s10  ;;  %s1107_s6 = scalar_lea.vmem %s3527_s21, %s3174_s0 }
  0x32   : > { %s3223_s13 = scalar_lea.vmem %s3582_s15, %s2608_s2  ;;  %s2673_s12 = sshll.u32 %s3174_s0, 5 }
  0x33   : > { %s3246_s29 = scalar_lea.vmem %s3528_s22, %s2673_s12  ;;  %s3585_s30 = sld [smem:[#allocation28_spill]] }
  0x34   : > { %s3236_s26 = scalar_lea.vmem %s3584_s20, %s2670_s24  ;;  %s2613_s4 = sshll.u32 %s3630_s5, 3 }
  0x35   : > { %s3586_s27 = sld [smem:[#allocation33_spill]]  ;;  %s3587_s19 = sld [smem:[#allocation32_spill]] }
  0x36   : > { %s3588_s23 = sld [smem:[#allocation3_spill]] }
  0x39   : > { %s1115_s3 = scalar_lea.vmem %s3585_s30, %s3174_s0 }
  0x3b   : > { %s1123_s24 = scalar_lea.vmem %s3586_s27, %s3177_s11  ;;  %s3260_s28 = scalar_lea.vmem %s3587_s19, %s2613_s4 }
  0x3c   : > { %p2615_p7 = scmp.ne.s32.totalorder %s3588_s23, 0 }
  0x3d   : > { %s3589_s1 = sld [smem:[#allocation14_spill]] (!%p2615_p7)  ;;  %v2979_v1 = vmov (!%p2615_p7), 0.0   ;;  %v1129_v2 = vld [vmem:[%s1060_s25] sm:$0xf] (!%p2615_p7)  ;;  %vm1145_vm0 = vcmask (!%p2615_p7), 130048   ;;  %vm2980_vm1 = vmmov (!%p2615_p7), 0  }
  0x3e   : > { %1128 = sbr.rel (%p2615_p7) target bundleno = 726 (0x2d6), region = 136  ;;  %2718 = vmatprep.subr.bf16.mxu0 (!%p2615_p7), %v2979_v1  ;;  %2724 = vmatprep.subr.bf16.mxu1 (!%p2615_p7), %v2979_v1  ;;  %s3590_s19 = sld [smem:[#allocation16_spill]] (!%p2615_p7)  ;;  %vm1214_vm2 = vcmask (!%p2615_p7), 261120  }
  0x3f   : > { %2720 = vmatprep.mubr.msk.bf16.mxu0 (!%p2615_p7), %vm2980_vm1, %v2979_v1  ;;  %2728 = vmatprep.mubr.msk.bf16.mxu1 (!%p2615_p7), %vm2980_vm1, %v2979_v1  ;;  %s3591_s9 = sld [smem:[#allocation19_spill]] (!%p2615_p7)  ;;  %s3593_s23 = sld [smem:[#allocation15_spill]] (!%p2615_p7) }
  0x40   : > { %s3597_s2 = sld [smem:[#allocation17_spill]] (!%p2615_p7)  ;;  %s3598_s15 = sld [smem:[#allocation20_spill]] (!%p2615_p7) }
  0x41   : > { %s3599_s30 = sld [smem:[#allocation12_spill]] (!%p2615_p7) }
  0x43   : > { %v2894_v0 = vld [vmem:[%s3589_s1] sm:$0xff] (!%p2615_p7)   ;;  %s3594_s1 = sld [smem:[#allocation18_spill]] (!%p2615_p7) }
  0x44   : > { %2719 = vmatpush3.bf16.msra.mxu0 (!%p2615_p7), %v2894_v0  ;;  %v2895_v3 = vld [vmem:[%s3590_s19] sm:$0xff] (!%p2615_p7)   ;;  %v2896_v4 = vld [vmem:[%s3590_s19 + $0x8] sm:$0xff] (!%p2615_p7)  }
  0x45   : > { %2732 = vmatprep.subr.bf16.mxu0 %v2979_v1  ;;  %2725 = vmatpush3.bf16.msra.mxu1 %v2895_v3  ;;  %s3592_s4 = smov %s3591_s9  ;;  %v2898_v5 = vld [vmem:[%s3591_s9] sm:$0xff]   ;;  %s3595_s9 = sld [smem:[#allocation10_spill]] }
  0x46   : > { %2726 = vmatprep.subr.bf16.mxu1 %v2979_v1  ;;  %v2616_v6 = vld [vmem:[%s3593_s23] ss:$0 sm:$0xff]  ;;  %v2900_v16 = vld [vmem:[%s3592_s4 + $0x8] sm:$0xff]  }
  0x47   : > { %2721 = vmatmul.mubr.msk.bf16.vlgmr.msra.gmra.mrb[0].mxu0 %vm1145_vm0, %v1129_v2  ;;  %v2619_v18 = vld [vmem:[%s3597_s2] ss:$0 sm:$0xff] }
  0x48   : > { %2736 = vmatprep.mubr.msk.bf16.mxu0 %vm2980_vm1, %v2979_v1  ;;  %2733 = vmatpush3.bf16.msra.mxu0 %v2898_v5  ;;  %v2629_v30 = vld [vmem:[%s3598_s15] ss:$0 sm:$0xff] }
  0x49   : > { %2727 = vmatpush3.bf16.msra.mxu1 %v2896_v4  ;;  %2734 = vmatprep.subr.bf16.mxu0 %v2979_v1  ;;  %v2897_v13 = vld [vmem:[%s3594_s1] sm:$0xff]   ;;  %v2899_v15 = vld [vmem:[%s3594_s1 + $0x8] sm:$0xff]  }
  0x4a   : > { %2740 = vmatprep.subr.bf16.mxu1 %v2979_v1  ;;  %v1387_v36 = vld [vmem:[%s3599_s30] sm:$0xff] }
  0x4b   : > { %s3596_s27 = scalar_lea.vmem %s3595_s9, %s3177_s11 }
  0x4c   : > { %v1258_v17 = vld [vmem:[%s3596_s27] sm:$0xf]  ;;  %2735 = vmatpush3.bf16.msra.mxu0 %v2900_v16 }
 0x11a   : > { %v1183_v7 = vpop.f32.mrb[0].mxu0 }
 0x11b   : > { %v1184_v8 = vadd.f32 %v2616_v6, %v1183_v7  ;;  %v2722_v9 = vpop.f32.mrb[1].mxu0 }
 0x11c   : > { %v1186_v10 = vpop.f32.mrb[2].mxu0 }
 0x11d   : > { %v1189_v11 = vmax.f32 %v1184_v8, 0.0  ;;  %v2723_v12 = vpop.f32.mrb[3].mxu0 }
 0x11f   : > { %v1190_v14 = vpack.c.bf16 %v1189_v11, %v1189_v11 }
 0x121   : > { %2729 = vmatmul.mubr.msk.bf16.vlgmr.msra.gmra.mrb[0].mxu1 %vm1214_vm2, %v1190_v14 }
 0x122   : > { %2741 = vmatpush3.bf16.msra.mxu1 %v2897_v13  ;;  %2744 = vmatprep.mubr.msk.bf16.mxu1 %vm2980_vm1, %v2979_v1 }
 0x123   : > { %2742 = vmatprep.subr.bf16.mxu1 %v2979_v1 }
 0x126   : > { %2743 = vmatpush3.bf16.msra.mxu1 %v2899_v15 }
 0x129   : > { %2745 = vmatmul.mubr.msk.bf16.vlgmr.msra.gmra.mrb[4].mxu1 %vm1214_vm2, %v1258_v17 }
 0x1f4   : > { %v1252_v19 = vpop.f32.mrb[0].mxu1 }
 0x1f5   : > { %v1253_v20 = vadd.f32 %v2619_v18, %v1252_v19  ;;  %v2730_v21 = vpop.f32.mrb[1].mxu1 }
 0x1f6   : > { %v1255_v22 = vpop.f32.mrb[2].mxu1 }
 0x1f7   : > { %v1263_v23 = vpack.c.bf16 %v1253_v20, %v1253_v20  ;;  %v2731_v24 = vpop.f32.mrb[3].mxu1 }
 0x1f9   : > { %2737 = vmatmul.mubr.msk.bf16.vlgmr.msra.gmra.mrb[4].mxu0 %vm1214_vm2, %v1263_v23 }
 0x1fc   : > { %v1372_v25 = vpop.f32.mrb[4].mxu1 }
 0x1fd   : > { %v2746_v26 = vpop.f32.mrb[5].mxu1 }
 0x1fe   : > { %v1375_v27 = vpop.f32.mrb[6].mxu1 }
 0x1ff   : > { %v2747_v28 = vpop.f32.mrb[7].mxu1 }
 0x2cc   : > { %v1317_v29 = vpop.f32.mrb[4].mxu0 }
 0x2cd   : > { %v1373_v31 = vadd.f32 %v1372_v25, %v1317_v29  ;;  %v2738_v32 = vpop.f32.mrb[5].mxu0 }
 0x2ce   : > { %v1320_v33 = vpop.f32.mrb[6].mxu0 }
 0x2cf   : > { %v1385_v34 = vadd.f32 %v2629_v30, %v1373_v31  ;;  %v2739_v35 = vpop.f32.mrb[7].mxu0 }
 0x2d1   : > { %v1386_v37 = vmax.f32 %v1385_v34, 0.0 }
 0x2d3   : > { %v1388_v38 = vadd.f32 %v1387_v36, %v1386_v37 }
 0x2d5   : > { %1389 = vst.msk [vmem:[#allocation2] sm:$0xff] %vm1214_vm2, %v1388_v38 }
 0x2d6 PF: > { %v2901_v39 = vld [vmem:[%s3199_s7] sm:$0xff]   ;;  %v2981_v40 = vmov 0.0   ;;  %v2902_v41 = vld [vmem:[%s3199_s7 + $0x8] sm:$0xff]   ;;  %vm2982_vm3 = vmmov 0   ;;  %vm1415_vm4 = vcmask 261120   ;;  %s3600_s9 = sld [smem:[#allocation22_spill]]  ;;  %v1675_v51 = vlaneseq }
 0x2d7   : > { %2748 = vmatprep.subr.bf16.mxu0 %v2981_v40  ;;  %2756 = vmatprep.subr.bf16.mxu1 %v2981_v40  ;;  %s2983_s8 = smov 104   ;;  %s2984_s23 = smov 120   ;;  %vm1476_vm5 = vcmask 64512   ;;  %v1674_v59 = vld [vmem:[%s3223_s13] sm:$0xf]  ;;  %vm1771_vm6 = vcmask 1043456  }
 0x2d8   : > { %2749 = vmatpush3.bf16.msra.mxu0 %v2901_v39  ;;  %2752 = vmatprep.mubr.msk.bf16.mxu0 %vm2982_vm3, %v2981_v40  ;;  %s2985_s2 = smov 112   ;;  %s2986_s12 = smov 96   ;;  %v1676_v52 = vshrl.u32 %v1675_v51, 7  ;;  %vm1972_vm7 = vcmask 130048   ;;  %vm1974_vm8 = vcmask 195584   ;;  %vm2182_vm9 = vcmask 523264  }
 0x2d9   : > { %2750 = vmatprep.subr.bf16.mxu0 %v2981_v40  ;;  %2758 = vmatprep.mubr.msk.bf16.mxu1 %vm2982_vm3, %v2981_v40  ;;  %s3602_s15 = sld [smem:[#allocation13_spill]]  ;;  %s3604_s25 = sld [smem:[#allocation9_spill]] }
 0x2da   : > { %v1677_v56 = vsub.s32 0, %v1676_v52  ;;  %v1691_v0 = vsub.s32 2, %v1676_v52  ;;  %v1684_v2 = vsub.s32 1, %v1676_v52  ;;  %v1698_v4 = vsub.s32 3, %v1676_v52  ;;  %s2988_s30 = smov 8   ;;  %s2989_s7 = smov 16  }
 0x2db   : > { %s2990_s10 = smov 24  }
 0x2dc   : > { %v3315_v42 = vld [vmem:[#allocation2] sm:$0xff]  ;;  %2751 = vmatpush3.bf16.msra.mxu0 %v2902_v41  ;;  %s3601_s27 = scalar_lea.vmem %s3600_s9, %s3174_s0  ;;  %v1678_v63 = vrot.slane %v1674_v59, %v1677_v56  ;;  %v1692_v1 = vrot.slane %v1674_v59, %v1691_v0  ;;  %v1685_v3 = vrot.slane %v1674_v59, %v1684_v2  ;;  %v1699_v5 = vrot.slane %v1674_v59, %v1698_v4 }
 0x2dd   : > { %v1391_v43 = vpack.c.bf16 %v3315_v42, %v3315_v42  ;;  %2762 = vmatprep.subr.bf16.mxu0 %v2981_v40  ;;  %v2630_v44 = vld [vmem:[%s3601_s27] ss:$0 sm:$0xff]  ;;  %s3611_s27 = sld [smem:[#allocation26_spill]] }
 0x2df   : > { %2753 = vmatmul.mubr.msk.bf16.vlgmr.msra.gmra.mrb[0].mxu0 %vm1415_vm4, %v1391_v43  ;;  %s3603_s20 = scalar_lea.vmem %s3602_s15, %s3630_s5  ;;  %s2987_s5 = smov 64  }
 0x2e0   : > { %2764 = vmatprep.mubr.msk.bf16.mxu0 %vm2982_vm3, %v2981_v40  ;;  %v2638_v17 = vld [vmem:[%s3603_s20] ss:$0 sm:$0xff]  ;;  %s3608_s15 = scalar_lea.vmem %s3523_s17, %s3174_s0 }
 0x3b2   : > { %v1453_v45 = vpop.f32.mrb[0].mxu0 }
 0x3b3   : > { %v1454_v46 = vadd.f32 %v2630_v44, %v1453_v45  ;;  %v2754_v47 = vpop.f32.mrb[1].mxu0 }
 0x3b4   : > { %v1456_v48 = vpop.f32.mrb[2].mxu0 }
 0x3b5   : > { %1466 = vrot.lane.b32.xlu1 %v1454_v46, %s2983_s8  ;;  %1460 = vrot.lane.b32.xlu0 %v1454_v46, %s2984_s23  ;;  %v2755_v49 = vpop.f32.mrb[3].mxu0  ;;  %v3331_v50 = vpack.c.bf16 %v1454_v46, %v1454_v46  ;;  %s3605_s8 = sld [smem:[#allocation24_spill]] }
 0x3b9   : > { %1463 = vrot.lane.b32.xlu0 %v1454_v46, %s2985_s2  ;;  %1474 = vrot.lane.b32.xlu1 %v3331_v50, %s2986_s12 }
 0x3bb   : > { %s3606_s23 = scalar_lea.vmem %s3605_s8, %s3174_s0  ;;  %s3612_s8 = scalar_lea.vmem %s3611_s27, %s3174_s0 }
 0x427   : > { %v1467_v53 = vpop.permute.xlu1 %1466  ;;  %v1461_v54 = vpop.permute.xlu0 %1460 }
 0x428   : > { %v3334_v55 = vpack.c.bf16 %v1461_v54, %v1461_v54  ;;  %v3338_v60 = vpack.c.bf16 %v1467_v53, %v1467_v53 }
 0x42a   : > { %1524 = vrot.lane.b32.xlu0 %v3334_v55, %s2986_s12 }
 0x42b   : > { %v1464_v57 = vpop.permute.xlu0 %1463  ;;  %v1475_v58 = vpop.permute.xlu1 %1474 }
 0x42c   : > { %v3340_v61 = vpack.c.bf16 %v1464_v57, %v1464_v57  ;;  %v1481_v62 = vsel %vm1476_vm5, %v1475_v58, 0 }
 0x42d   : > { %2757 = vmatpush3.bf16.xpose.msra.mxu1 %v1481_v62 }
 0x42e   : > { %1622 = vrot.lane.b32.xlu0 %v3338_v60, %s2986_s12  ;;  %1573 = vrot.lane.b32.xlu1 %v3340_v61, %s2986_s12  ;;  %s3607_s12 = scalar_lea.vmem %s3522_s16, %s3174_s0 }
 0x42f   : > { %2768 = vmatprep.subr.bf16.mxu1 %v2981_v40 }
 0x432   : > { %1680 = vbcast.lane.b32.xlu1 %v1678_v63, 256  ;;  %1687 = vbcast.lane.b32.xlu0 %v1685_v3, 256 }
 0x434   : > { %2759 = vmatmul.mubr.msk.bf16.vlgmr.msra.gmra.mrb[0].mxu1 %vm1476_vm5, %v3331_v50 }
 0x435   : > { %2770 = vmatprep.mubr.msk.bf16.mxu1 %vm2982_vm3, %v2981_v40 }
 0x436   : > { %1694 = vbcast.lane.b32.xlu1 %v1692_v1, 256  ;;  %1701 = vbcast.lane.b32.xlu0 %v1699_v5, 256 }
 0x49c   : > { %v1525_v6 = vpop.permute.xlu0 %1524 }
 0x49d   : > { %v1530_v7 = vsel %vm1476_vm5, %v1525_v6, 0 }
 0x49e   : > { %2763 = vmatpush3.bf16.xpose.msra.mxu0 %v1530_v7 }
 0x49f   : > { %2774 = vmatprep.subr.bf16.mxu0 %v2981_v40 }
 0x4a0   : > { %v1574_v8 = vpop.permute.xlu1 %1573  ;;  %v1623_v10 = vpop.permute.xlu0 %1622 }
 0x4a1   : > { %v1579_v9 = vsel %vm1476_vm5, %v1574_v8, 0  ;;  %v1628_v11 = vsel %vm1476_vm5, %v1623_v10, 0 }
 0x4a2   : > { %2769 = vmatpush3.bf16.xpose.msra.mxu1 %v1579_v9 }
 0x4a3   : > { %2780 = vmatprep.subr.bf16.mxu1 %v2981_v40 }
 0x4a4   : > { %v1681_v13 = vpop.permute.xlu1 %1680  ;;  %v1688_v23 = vpop.permute.xlu0 %1687 }
 0x4a5   : > { %2765 = vmatmul.mubr.msk.bf16.vlgmr.msra.gmra.mrb[4].mxu0 %vm1476_vm5, %v3334_v55 }
 0x4a6   : > { %2775 = vmatpush3.bf16.xpose.msra.mxu0 %v1628_v11  ;;  %2776 = vmatprep.mubr.msk.bf16.mxu0 %vm2982_vm3, %v2981_v40 }
 0x4a7   : > { %2786 = vmatprep.subr.bf16.mxu0 %v2981_v40 }
 0x4a8   : > { %v1695_v30 = vpop.permute.xlu1 %1694  ;;  %v1702_v39 = vpop.permute.xlu0 %1701 }
 0x4a9   : > { %2771 = vmatmul.mubr.msk.bf16.vlgmr.msra.gmra.mrb[4].mxu1 %vm1476_vm5, %v3340_v61 }
 0x4aa   : > { %2782 = vmatprep.mubr.msk.bf16.mxu1 %vm2982_vm3, %v2981_v40 }
 0x4ad   : > { %2777 = vmatmul.mubr.msk.bf16.vlgmr.msra.gmra.mrb[8].mxu0 %vm1476_vm5, %v3338_v60 }
 0x4ae   : > { %2788 = vmatprep.mubr.msk.bf16.mxu0 %vm2982_vm3, %v2981_v40 }
 0x507   : > { %v1517_v12 = vpop.f32.mrb[0].mxu1 }
 0x508   : > { %v1670_v14 = vmul.f32 0.35355338, %v1517_v12  ;;  %v2760_v15 = vpop.f32.mrb[1].mxu1 }
 0x509   : > { %v1520_v16 = vpop.f32.mrb[2].mxu1 }
 0x50a   : > { %v1703_v18 = vadd.f32 %v1681_v13, %v1670_v14  ;;  %v2761_v19 = vpop.f32.mrb[3].mxu1 }
 0x50c   : > { %v1714_v20 = vadd.f32 %v2638_v17, %v1703_v18 }
 0x50e   : > { %v1718_v21 = vsel %vm1476_vm5, %v1714_v20, -inf }
 0x50f   : > { %1719 = vmax.xlane.f32.xlu1 %v1718_v21 }
 0x578   : > { %v1566_v22 = vpop.f32.mrb[4].mxu0 }
 0x579   : > { %v1671_v24 = vmul.f32 0.35355338, %v1566_v22  ;;  %v2766_v25 = vpop.f32.mrb[5].mxu0 }
 0x57a   : > { %v1569_v26 = vpop.f32.mrb[6].mxu0 }
 0x57b   : > { %v1704_v27 = vadd.f32 %v1688_v23, %v1671_v24  ;;  %v2767_v28 = vpop.f32.mrb[7].mxu0 }
 0x57c   : > { %v1615_v29 = vpop.f32.mrb[4].mxu1 }
 0x57d   : > { %v1672_v31 = vmul.f32 0.35355338, %v1615_v29  ;;  %v2772_v32 = vpop.f32.mrb[5].mxu1  ;;  %v1715_v33 = vadd.f32 %v2638_v17, %v1704_v27 }
 0x57e   : > { %v1618_v34 = vpop.f32.mrb[6].mxu1 }
 0x57f   : > { %v1705_v35 = vadd.f32 %v1695_v30, %v1672_v31  ;;  %v2773_v36 = vpop.f32.mrb[7].mxu1  ;;  %v1721_v37 = vsel %vm1476_vm5, %v1715_v33, -inf }
 0x580   : > { %1722 = vmax.xlane.f32.xlu0 %v1721_v37  ;;  %v1664_v38 = vpop.f32.mrb[8].mxu0  ;;  %v2904_v36 = vld [vmem:[%s3604_s25 + $0x8] sm:$0xff]  }
 0x581   : > { %v1673_v41 = vmul.f32 0.35355338, %v1664_v38  ;;  %v2778_v43 = vpop.f32.mrb[9].mxu0  ;;  %v1716_v44 = vadd.f32 %v2638_v17, %v1705_v35  ;;  %v2903_v35 = vld [vmem:[%s3604_s25] sm:$0xff]  }
 0x582   : > { %v1667_v45 = vpop.f32.mrb[10].mxu0 }
 0x583   : > { %v1706_v46 = vadd.f32 %v1702_v39, %v1673_v41  ;;  %v2779_v47 = vpop.f32.mrb[11].mxu0  ;;  %v1724_v48 = vsel %vm1476_vm5, %v1716_v44, -inf }
 0x584   : > { %1725 = vmax.xlane.f32.xlu0 %v1724_v48 }
 0x585   : > { %v1717_v49 = vadd.f32 %v2638_v17, %v1706_v46 }
 0x587   : > { %v1727_v51 = vsel %vm1476_vm5, %v1717_v49, -inf }
 0x588   : > { %1728 = vmax.xlane.f32.xlu1 %v1727_v51 }
 0x599   : > { %1815 = vrot.lane.b32.xlu1 %v3334_v55, %s2987_s5 }
 0x59a   : > { %1766 = vrot.lane.b32.xlu0 %v3331_v50, %s2987_s5 }
 0x59c   : > { %v1720_v52 = vpop.xlane.xlu1 %1719 }
 0x59d   : > { %v1730_v53 = vsub.f32 %v1714_v20, %v1720_v52 }
 0x59f   : > { %v1734_v54 = vmul.f32 1.442695, %v1730_v53 }
 0x5a1   : > { %2911 = vpow2.f32 %v1734_v54 }
 0x5ab   : > { %v2912_v56 = vpop.eup %2911 }
 0x5ac   : > { %v1742_v57 = vsel %vm1476_vm5, %v2912_v56, 0.0 }
 0x5b9   : > { %1743 = vadd.xlane.f32.xlu0 %v1742_v57 }
 0x60d   : > { %v1723_v58 = vpop.xlane.xlu0 %1722 }
 0x60e   : > { %v1731_v59 = vsub.f32 %v1715_v33, %v1723_v58 }
 0x610   : > { %v1736_v62 = vmul.f32 1.442695, %v1731_v59 }
 0x611   : > { %v1726_v63 = vpop.xlane.xlu0 %1725 }
 0x612   : > { %2913 = vpow2.f32 %v1736_v62  ;;  %v1732_v0 = vsub.f32 %v1716_v44, %v1726_v63  ;;  %v2643_v62 = vld [vmem:[%s3606_s23] ss:$0 sm:$0xff]  ;;  %s3613_s23 = sld [smem:[#allocation3_spill]] }
 0x614   : > { %v1738_v1 = vmul.f32 1.442695, %v1732_v0 }
 0x615   : > { %v1767_v55 = vpop.permute.xlu0 %1766  ;;  %v1729_v2 = vpop.xlane.xlu1 %1728 }
 0x616   : > { %2915 = vpow2.f32 %v1738_v1  ;;  %v1773_v50 = vsel %vm1771_vm6, %v1767_v55, 0  ;;  %v1733_v3 = vsub.f32 %v1717_v49, %v1729_v2 }
 0x617   : > { %2781 = vmatpush3.bf16.msra.mxu1 %v1773_v50 }
 0x618   : > { %v1740_v4 = vmul.f32 1.442695, %v1733_v3  ;;  %2792 = vmatprep.subr.bf16.mxu1 %v2981_v40  ;;  %p2661_p8 = scmp.ne.s32.totalorder %s3613_s23, 1 }
 0x619   : > { %v1816_v5 = vpop.permute.xlu1 %1815  ;;  %s3614_s2 = sld [smem:[#allocation31_spill]] (!%p2661_p8)  ;;  %vm2992_vm10 = vmmov (!%p2661_p8), 0   ;;  %s3615_s20 = sld [smem:[#allocation29_spill]] (!%p2661_p8)  ;;  %vm2359_vm11 = vcmask (!%p2661_p8), 257024  }
 0x61a   : > { %2917 = vpow2.f32 %v1740_v4  ;;  %v1821_v6 = vsel %vm1771_vm6, %v1816_v5, 0 }
 0x61b   : > { %2787 = vmatpush3.bf16.msra.mxu0 %v1821_v6 }
 0x61c   : > { %v2914_v7 = vpop.eup %2913  ;;  %2798 = vmatprep.subr.bf16.mxu0 %v2981_v40 }
 0x61d   : > { %v1745_v8 = vsel %vm1476_vm5, %v2914_v7, 0.0 }
 0x61e   : > { %1746 = vadd.xlane.f32.xlu1 %v1745_v8 }
 0x620   : > { %v2916_v9 = vpop.eup %2915 }
 0x621   : > { %v1748_v10 = vsel %vm1476_vm5, %v2916_v9, 0.0 }
 0x622   : > { %1749 = vadd.xlane.f32.xlu0 %v1748_v10  ;;  %v2906_v10 = vld [vmem:[%s3236_s26 + $0x8] sm:$0xff]  }
 0x624   : > { %v2918_v11 = vpop.eup %2917 }
 0x625   : > { %v1751_v12 = vsel %vm1476_vm5, %v2918_v11, 0.0 }
 0x626   : > { %1752 = vadd.xlane.f32.xlu1 %v1751_v12 }
 0x637   : > { %1863 = vrot.lane.b32.xlu1 %v3340_v61, %s2987_s5 }
 0x638   : > { %1911 = vrot.lane.b32.xlu0 %v3338_v60, %s2987_s5 }
 0x646   : > { %v1744_v13 = vpop.xlane.xlu0 %1743 }
 0x647   : > { %2919 = vrcp.f32 %v1744_v13 }
 0x651   : > { %v2920_v14 = vpop.eup %2919 }
 0x652   : > { %v1758_v15 = vmul.f32 %v2920_v14, %v2912_v56 }
 0x654   : > { %v1762_v16 = vpack.c.bf16 %v1758_v15, %v1758_v15 }
 0x656   : > { %2783 = vmatmul.mubr.msk.bf16.vlgmr.msra.gmra.mrb[8].mxu1 %vm1476_vm5, %v1762_v16  ;;  %v2647_v16 = vld [vmem:[%s3607_s12] ss:$0 sm:$0xff] }
 0x657   : > { %2794 = vmatprep.mubr.msk.bf16.mxu1 %vm2982_vm3, %v2981_v40 }
 0x6ab   : > { %v1747_v17 = vpop.xlane.xlu1 %1746 }
 0x6ac   : > { %2921 = vrcp.f32 %v1747_v17 }
 0x6af   : > { %v1750_v18 = vpop.xlane.xlu0 %1749 }
 0x6b0   : > { %2923 = vrcp.f32 %v1750_v18  ;;  %v2648_v18 = vld [vmem:[%s3608_s15] ss:$0 sm:$0xff] }
 0x6b3   : > { %v1753_v19 = vpop.xlane.xlu1 %1752  ;;  %v1912_v60 = vpop.permute.xlu0 %1911 }
 0x6b4   : > { %2925 = vrcp.f32 %v1753_v19  ;;  %v1917_v26 = vsel %vm1771_vm6, %v1912_v60, 0  ;;  %v2910_v60 = vld [vmem:[%s3246_s29 + $0x18] sm:$0xff]  }
 0x6b6   : > { %v2922_v61 = vpop.eup %2921 }
 0x6b7   : > { %v1759_v20 = vmul.f32 %v2922_v61, %v2914_v7  ;;  %v1864_v21 = vpop.permute.xlu1 %1863 }
 0x6b8   : > { %v1869_v22 = vsel %vm1771_vm6, %v1864_v21, 0  ;;  %v2909_v21 = vld [vmem:[%s3246_s29 + $0x10] sm:$0xff]  }
 0x6b9   : > { %2793 = vmatpush3.bf16.msra.mxu1 %v1869_v22  ;;  %v1763_v23 = vpack.c.bf16 %v1759_v20, %v1759_v20  ;;  %v2649_v22 = vld [vmem:[%s1107_s6] ss:$0 sm:$0xff] }
 0x6ba   : > { %v2924_v24 = vpop.eup %2923  ;;  %2804 = vmatprep.subr.bf16.mxu1 %v2981_v40 }
 0x6bb   : > { %v1760_v25 = vmul.f32 %v2924_v24, %v2916_v9  ;;  %2789 = vmatmul.mubr.msk.bf16.vlgmr.msra.gmra.mrb[12].mxu0 %vm1476_vm5, %v1763_v23  ;;  %v2905_v9 = vld [vmem:[%s3236_s26] sm:$0xff]  }
 0x6bc   : > { %2799 = vmatpush3.bf16.msra.mxu0 %v1917_v26  ;;  %2800 = vmatprep.mubr.msk.bf16.mxu0 %vm2982_vm3, %v2981_v40 }
 0x6bd   : > { %v1764_v27 = vpack.c.bf16 %v1760_v25, %v1760_v25  ;;  %2812 = vmatprep.subr.bf16.mxu0 %v2981_v40 }
 0x6be   : > { %v2926_v28 = vpop.eup %2925 }
 0x6bf   : > { %v1761_v29 = vmul.f32 %v2926_v28, %v2918_v11  ;;  %2795 = vmatmul.mubr.msk.bf16.vlgmr.msra.gmra.mrb[12].mxu1 %vm1476_vm5, %v1764_v27  ;;  %v2908_v11 = vld [vmem:[%s3246_s29 + $0x8] sm:$0xff]  }
 0x6c0   : > { %2808 = vmatprep.mubr.msk.bf16.mxu1 %vm2982_vm3, %v2981_v40  ;;  %2805 = vmatpush3.bf16.msra.mxu1 %v2903_v35 }
 0x6c1   : > { %v1765_v30 = vpack.c.bf16 %v1761_v29, %v1761_v29  ;;  %2806 = vmatprep.subr.bf16.mxu1 %v2981_v40 }
 0x6c3   : > { %2801 = vmatmul.mubr.msk.bf16.vlgmr.msra.gmra.mrb[16].mxu0 %vm1476_vm5, %v1765_v30 }
 0x6c4   : > { %2816 = vmatprep.mubr.msk.bf16.mxu0 %vm2982_vm3, %v2981_v40  ;;  %2807 = vmatpush3.bf16.msra.mxu1 %v2904_v36 }
 0x6c5   : > { %2820 = vmatprep.subr.bf16.mxu1 %v2981_v40  ;;  %2813 = vmatpush3.bf16.msra.mxu0 %v2905_v9 }
 0x6c6   : > { %2814 = vmatprep.subr.bf16.mxu0 %v2981_v40 }
 0x6c9   : > { %2815 = vmatpush3.bf16.msra.mxu0 %v2906_v10  ;;  %v2295_v10 = vld [vmem:[%s3260_s28] sm:$0xff] (!%p2661_p8) }
 0x729   : > { %v1809_v31 = vpop.f32.mrb[8].mxu1 }
 0x72a   : > { %v2784_v32 = vpop.f32.mrb[9].mxu1 }
 0x72b   : > { %v1812_v33 = vpop.f32.mrb[10].mxu1 }
 0x72c   : > { %v2785_v34 = vpop.f32.mrb[11].mxu1 }
 0x78e   : > { %v1857_v37 = vpop.f32.mrb[12].mxu0 }
 0x78f   : > { %1960 = vrot.lane.b32.xlu1 %v1857_v37, %s2988_s30  ;;  %v2790_v38 = vpop.f32.mrb[13].mxu0  ;;  %s3616_s30 = sld [smem:[#allocation30_spill]] (!%p2661_p8) }
 0x790   : > { %v1860_v39 = vpop.f32.mrb[14].mxu0 }
 0x791   : > { %v2791_v41 = vpop.f32.mrb[15].mxu0 }
 0x792   : > { %v1905_v43 = vpop.f32.mrb[12].mxu1 }
 0x793   : > { %1964 = vrot.lane.b32.xlu0 %v1905_v43, %s2989_s7  ;;  %v2796_v44 = vpop.f32.mrb[13].mxu1 }
 0x794   : > { %v1908_v45 = vpop.f32.mrb[14].mxu1 }
 0x795   : > { %v2797_v46 = vpop.f32.mrb[15].mxu1 }
 0x796   : > { %v1953_v47 = vpop.f32.mrb[16].mxu0 }
 0x797   : > { %1968 = vrot.lane.b32.xlu1 %v1953_v47, %s2990_s10  ;;  %v2802_v48 = vpop.f32.mrb[17].mxu0 }
 0x798   : > { %v1956_v49 = vpop.f32.mrb[18].mxu0 }
 0x799   : > { %v2803_v51 = vpop.f32.mrb[19].mxu0 }
 0x79a   : > { %v2660_v51 = vld [vmem:[%s3612_s8] ss:$0 sm:$0xff] }
 0x801   : > { %v1961_v52 = vpop.permute.xlu1 %1960 }
 0x802   : > { %v1971_v54 = vsel %vm1476_vm5, %v1809_v31, %v1961_v52 }
 0x805   : > { %v1965_v53 = vpop.permute.xlu0 %1964 }
 0x806   : > { %v1973_v56 = vsel %vm1972_vm7, %v1971_v54, %v1965_v53 }
 0x809   : > { %v1969_v57 = vpop.permute.xlu1 %1968 }
 0x80a   : > { %v1975_v58 = vsel %vm1974_vm8, %v1973_v56, %v1969_v57 }
 0x80b   : > { %v1976_v59 = vpack.c.bf16 %v1975_v58, %v1975_v58 }
 0x80d   : > { %2809 = vmatmul.mubr.msk.bf16.vlgmr.msra.gmra.mrb[16].mxu1 %vm1415_vm4, %v1976_v59 }
 0x80e   : > { %2828 = vmatprep.mubr.msk.bf16.mxu1 %vm2982_vm3, %v2981_v40 }
 0x8e0   : > { %v2037_v63 = vpop.f32.mrb[16].mxu1 }
 0x8e1   : > { %v2038_v0 = vadd.f32 %v2643_v62, %v2037_v63  ;;  %v2810_v1 = vpop.f32.mrb[17].mxu1  ;;  %v2931_v63 = vld [vmem:[%s3614_s2] sm:$0xff] (!%p2661_p8)  }
 0x8e2   : > { %v2040_v55 = vpop.f32.mrb[18].mxu1  ;;  %v2932_v1 = vld [vmem:[%s3614_s2 + $0x8] sm:$0xff] (!%p2661_p8)  }
 0x8e3   : > { %v2811_v2 = vpop.f32.mrb[19].mxu1  ;;  %v2043_v50 = vadd.f32 %v2038_v0, %v3315_v42  ;;  %v2907_v42 = vld [vmem:[%s3246_s29] sm:$0xff]   ;;  %v2991_v0 = vmov (!%p2661_p8), 0.0  }
 0x8e4   : > { %2821 = vmatpush3.bf16.msra.mxu1 %v2907_v42  ;;  %2832 = vmatprep.subr.bf16.mxu0 (!%p2661_p8), %v2991_v0 }
 0x8e5   : > { %v2046_v3 = vsel %vm1415_vm4, %v2043_v50, 0.0  ;;  %2822 = vmatprep.subr.bf16.mxu1 %v2981_v40 }
 0x8e6   : > { %2047 = vadd.xlane.f32.xlu0 %v2046_v3 }
 0x8e8   : > { %2823 = vmatpush3.bf16.msra.mxu1 %v2908_v11 }
 0x8e9   : > { %2824 = vmatprep.subr.bf16.mxu1 %v2981_v40 }
 0x8ec   : > { %2825 = vmatpush3.bf16.msra.mxu1 %v2909_v21 }
 0x8ed   : > { %2826 = vmatprep.subr.bf16.mxu1 %v2981_v40  ;;  %v2653_v40 = vld [vmem:[%s1115_s3] ss:$0 sm:$0xff]  ;;  %s3610_s3 = scalar_lea.vmem %s3524_s18, %s3174_s0 }
 0x8ee   : > { %v2659_v48 = vld [vmem:[%s3610_s3] ss:$0 sm:$0xff] }
 0x8f0   : > { %2827 = vmatpush3.bf16.msra.mxu1 %v2910_v60 }
 0x973   : > { %v2048_v4 = vpop.xlane.xlu0 %2047 }
 0x974   : > { %v2050_v5 = vmul.f32 0.03125, %v2048_v4  ;;  %v2662_v4 = vld [vmem:[%s3615_s20] ss:$0 sm:$0xff] (!%p2661_p8) }
 0x976   : > { %v2051_v6 = vsub.f32 %v2043_v50, %v2050_v5 }
 0x978   : > { %v2052_v7 = vmul.f32 %v2051_v6, %v2051_v6 }
 0x97a   : > { %v2053_v8 = vsel %vm1415_vm4, %v2052_v7, 0.0 }
 0x97b   : > { %2054 = vadd.xlane.f32.xlu1 %v2053_v8 }
 0xa08   : > { %v2055_v12 = vpop.xlane.xlu1 %2054 }
 0xa09   : > { %v2056_v13 = vmul.f32 0.03125, %v2055_v12 }
 0xa0b   : > { %v2057_v14 = vadd.f32 1e-05, %v2056_v13 }
 0xa0d   : > { %2927 = vrsqrt.f32 %v2057_v14 }
 0xa17   : > { %v2928_v15 = vpop.eup %2927 }
 0xa18   : > { %v2059_v17 = vmul.f32 %v2928_v15, %v2051_v6  ;;  %v2663_v6 = vld [vmem:[%s3616_s30] ss:$0 sm:$0xff] (!%p2661_p8) }
 0xa1a   : > { %v2066_v19 = vmul.f32 %v2647_v16, %v2059_v17 }
 0xa1c   : > { %v2073_v61 = vadd.f32 %v2648_v18, %v2066_v19 }
 0xa1e   : > { %v2074_v20 = vpack.c.bf16 %v2073_v61, %v2073_v61 }
 0xa20   : > { %2817 = vmatmul.mubr.msk.bf16.vlgmr.msra.gmra.mrb[20].mxu0 %vm1415_vm4, %v2074_v20 }
 0xa21   : > { %2836 = vmatprep.mubr.msk.bf16.mxu0 (!%p2661_p8), %vm2992_vm10, %v2991_v0  ;;  %2833 = vmatpush3.bf16.msra.mxu0 (!%p2661_p8), %v2931_v63 }
 0xa22   : > { %2834 = vmatprep.subr.bf16.mxu0 (!%p2661_p8), %v2991_v0 }
 0xa25   : > { %2835 = vmatpush3.bf16.msra.mxu0 (!%p2661_p8), %v2932_v1 }
 0xaf3   : > { %v2135_v23 = vpop.f32.mrb[20].mxu0 }
 0xaf4   : > { %v2136_v24 = vadd.f32 %v2649_v22, %v2135_v23  ;;  %v2818_v25 = vpop.f32.mrb[21].mxu0 }
 0xaf5   : > { %v2138_v26 = vpop.f32.mrb[22].mxu0 }
 0xaf6   : > { %v2141_v27 = vmax.f32 %v2136_v24, 0.0  ;;  %v2819_v28 = vpop.f32.mrb[23].mxu0 }
 0xaf8   : > { %v2142_v29 = vpack.c.bf16 %v2141_v27, %v2141_v27 }
 0xafa   : > { %2829 = vmatmul.mubr.msk.bf16.vlgmr.msra.gmra.mrb[20].mxu1 %vm2182_vm9, %v2142_v29 }
 0xbcd   : > { %v2220_v30 = vpop.f32.mrb[20].mxu1 }
 0xbce   : > { %v2221_v31 = vadd.f32 %v2653_v40, %v2220_v30  ;;  %v2830_v32 = vpop.f32.mrb[21].mxu1 }
 0xbcf   : > { %v2223_v33 = vpop.f32.mrb[22].mxu1 }
 0xbd0   : > { %v2831_v34 = vpop.f32.mrb[23].mxu1  ;;  %v2226_v35 = vadd.f32 %v2221_v31, %v2073_v61 }
 0xbd2   : > { %v2229_v36 = vsel %vm1415_vm4, %v2226_v35, 0.0 }
 0xbd3   : > { %2230 = vadd.xlane.f32.xlu0 %v2229_v36 }
 0xc60   : > { %v2231_v37 = vpop.xlane.xlu0 %2230 }
 0xc61   : > { %v2232_v38 = vmul.f32 0.03125, %v2231_v37 }
 0xc63   : > { %v2233_v39 = vsub.f32 %v2226_v35, %v2232_v38 }
 0xc65   : > { %v2234_v41 = vmul.f32 %v2233_v39, %v2233_v39 }
 0xc67   : > { %v2235_v43 = vsel %vm1415_vm4, %v2234_v41, 0.0 }
 0xc68   : > { %2236 = vadd.xlane.f32.xlu0 %v2235_v43 }
 0xcf5   : > { %v2237_v44 = vpop.xlane.xlu0 %2236 }
 0xcf6   : > { %v2238_v45 = vmul.f32 0.03125, %v2237_v44 }
 0xcf8   : > { %v2239_v46 = vadd.f32 1e-05, %v2238_v45 }
 0xcfa   : > { %2929 = vrsqrt.f32 %v2239_v46 }
 0xd04   : > { %v2930_v47 = vpop.eup %2929 }
 0xd05   : > { %v2241_v49 = vmul.f32 %v2930_v47, %v2233_v39  ;;  %2260 = sbr.rel (%p2661_p8) target bundleno = 3899 (0xf3b), region = 140 }
 0xd07   : > { %v2248_v52 = vmul.f32 %v2659_v48, %v2241_v49 }
 0xd09   : > { %v2255_v53 = vadd.f32 %v2660_v51, %v2248_v52 }
 0xd0b   : > { %2256 = vst.msk [vmem:[#allocation2] sm:$0xff] %vm1415_vm4, %v2255_v53  ;;  %v2263_v54 = vsel (!%p2661_p8), %vm1415_vm4, %v2255_v53, 0.0 }
 0xd0c   : > { %2264 = vadd.xlane.f32.xlu0 %v2263_v54 }
 0xd99   : > { %v2265_v56 = vpop.xlane.xlu0 %2264 }
 0xd9a   : > { %v2266_v57 = vmul.f32 0.03125, %v2265_v56 }
 0xd9c   : > { %v2267_v58 = vsub.f32 %v2255_v53, %v2266_v57 }
 0xd9e   : > { %v2268_v59 = vmul.f32 %v2267_v58, %v2267_v58 }
 0xda0   : > { %v2269_v62 = vsel %vm1415_vm4, %v2268_v59, 0.0 }
 0xda1   : > { %2270 = vadd.xlane.f32.xlu0 %v2269_v62 }
 0xe2e   : > { %v2271_v55 = vpop.xlane.xlu0 %2270 }
 0xe2f   : > { %v2272_v2 = vmul.f32 0.03125, %v2271_v55 }
 0xe31   : > { %v2273_v50 = vadd.f32 1e-05, %v2272_v2 }
 0xe33   : > { %2933 = vrsqrt.f32 %v2273_v50 }
 0xe3d   : > { %v2934_v3 = vpop.eup %2933 }
 0xe3e   : > { %v2275_v5 = vmul.f32 %v2934_v3, %v2267_v58 }
 0xe40   : > { %v2282_v7 = vmul.f32 %v2662_v4, %v2275_v5 }
 0xe42   : > { %v2289_v8 = vadd.f32 %v2663_v6, %v2282_v7 }
 0xe44   : > { %v2290_v9 = vpack.c.bf16 %v2289_v8, %v2289_v8 }
 0xe46   : > { %2837 = vmatmul.mubr.msk.bf16.vlgmr.msra.gmra.mrb[0].mxu0 %vm1415_vm4, %v2290_v9 }
 0xf19   : > { %v2345_v42 = vpop.f32.mrb[0].mxu0 }
 0xf1a   : > { %v2346_v11 = vadd.f32 %v2345_v42, %v2295_v10  ;;  %v2838_v12 = vpop.f32.mrb[1].mxu0 }
 0xf1b   : > { %v2348_v13 = vpop.f32.mrb[2].mxu0 }
 0xf1c   : > { %v2667_v14 = vmul.f32 -1.442695, %v2346_v11  ;;  %v2839_v15 = vpop.f32.mrb[3].mxu0 }
 0xf1e   : > { %2935 = vpow2.f32 %v2667_v14 }
 0xf28   : > { %v2936_v16 = vpop.eup %2935 }
 0xf29   : > { %v2354_v17 = vadd.f32 1.0, %v2936_v16 }
 0xf2b   : > { %2937 = vrcp.f32 %v2354_v17 }
 0xf35   : > { %v2938_v18 = vpop.eup %2937 }
 0xf36   : > { %v2357_v19 = vmul.f32 %v2938_v18, %v2289_v8 }
 0xf38   : > { %v2358_v61 = vpack.c.bf16 %v2357_v19, %v2357_v19 }
 0xf3a   : > { %2360 = vst.msk [vmem:[%s1123_s24] sm:$0xf] %vm2359_vm11, %v2358_v61 }
 0xf3b PF: > { %s3618_s28 = sld [smem:[#allocation6_spill]]  ;;  %s3619_s8 = sld [smem:[#allocation4_spill]] }
 0xf3c   : > { %s3620_s5 = sld [smem:[#allocation5_spill]]  ;;  %s3621_s9 = sld [smem:[#allocation7_spill]] }
 0xf3d   : > { %s3622_s30 = sld [smem:[#allocation8_spill]] }
 0xf41   : > { %s38_s3 = sadd.s32 1, %s3618_s28  }
 0xf42   : > { %p35_p9 = scmp.ge.s32.totalorder %s38_s3, 6  }
 0xf44   :  { %37 = sbr.rel (!%p35_p9) target bundleno = 25 (0x19), region = 218 }

</bundles_post_ra>
